<compile_context>
chip_gen: v7x
topology: tpu7x:2x2x1
jax: 0.10.0
libtpu: 0.0.40
codegen_flags: <defaults>
</compile_context>

<pallas_src>
import math

import jax
import jax.numpy as jnp
from jax.experimental import pallas as pl
from jax.experimental.pallas import tpu as pltpu

BN_EPS = 1e-5
LANE = 128       # final-output length padding (lane-dense, unmasked store)
SUBLANE = 8      # input-channel padding (sublane multiple)
_SQRT_2_OVER_PI = 0.7978845608028654


def _round_up(n, m):
    return ((n + m - 1) // m) * m


def _gelu(x):
    # tanh-approximate GELU (mul/add/tanh only -> guaranteed Mosaic lowering,
    # transcendental work lands on the otherwise-idle EUP slot).
    return 0.5 * x * (1.0 + jnp.tanh(_SQRT_2_OVER_PI * (x + 0.044715 * x * x * x)))


def _fold_bn(w, b, gamma, beta, mean, var):
    """Fold eval-mode BatchNorm1d exactly into the conv weight/bias."""
    s = gamma * jax.lax.rsqrt(var + BN_EPS)            # (C_out, 1)
    return w * s[None, :, :], (b - mean) * s + beta


def _interp_matrix(L_in, L_out, width):
    """M (L_in, width): x @ M[:, :L_out] == F.interpolate(x, L_out, 'linear',
    align_corners=False).  Columns [L_out, width) are zero (lane padding for
    the fused lane-dense output store).  Stored in bf16 (MXU operand)."""
    if L_in == L_out:
        M = jnp.eye(L_in, dtype=jnp.float32)
    else:
        scale = L_in / L_out
        j = jnp.arange(L_out, dtype=jnp.float32)
        src = jnp.maximum((j + 0.5) * scale - 0.5, 0.0)
        lo = jnp.floor(src).astype(jnp.int32)
        hi = jnp.minimum(lo + 1, L_in - 1)
        w_hi = src - lo.astype(jnp.float32)
        w_lo = 1.0 - w_hi
        rows = jnp.arange(L_in, dtype=jnp.int32)[:, None]
        M = (jnp.where(rows == lo[None, :], w_lo[None, :], 0.0)
             + jnp.where(rows == hi[None, :], w_hi[None, :], 0.0))
    if width > L_out:
        M = jnp.pad(M, ((0, 0), (0, width - L_out)))
    return M.astype(jnp.bfloat16)


def _const_spec(a):
    """Whole-array operand whose block index never changes (weights, interp
    matrix).  The constant index means it is fetched once and not re-DMA'd
    across grid steps."""
    if a.ndim == 2:
        return pl.BlockSpec(a.shape, lambda n: (0, 0))
    return pl.BlockSpec(a.shape, lambda n: (0, 0, 0))


# ----------------------------------------------------------------------------
# Fused whole-network kernel
# ----------------------------------------------------------------------------
def _make_tcn_kernel(metas, n_weight_refs, K):
    def kernel(*refs):
        x_ref = refs[0]
        w_refs = refs[1:1 + n_weight_refs]
        o_ref = refs[1 + n_weight_refs]
        s_refs = refs[2 + n_weight_refs:]

        a = x_ref[0]                                    # (C0_pad, L0) f32
        wi = 0
        for li, m in enumerate(metas):                  # static unroll (layers)
            d, pad = m["d"], m["pad"]
            L_in, L1, W = m["L_in"], m["L1"], m["W"]
            C_in, C_out = m["C_in"], m["C_out"]
            w1, b1, w2, b2, mm = w_refs[wi:wi + 5]
            wi += 5
            if m["has_ds"]:
                wd, bd = w_refs[wi:wi + 2]
                wi += 2
            s1, s2 = s_refs[2 * li], s_refs[2 * li + 1]

            ab = a.astype(jnp.bfloat16)                 # (C_in, L_in) bf16

            # ---- conv1 (+ folded BN1) + GELU --------------------------------
            # one data copy into the zero-padded staging buffer; zero ONLY the
            # two pad strips (everything else is fully overwritten).
            s1[:, pad:pad + L_in] = ab
            if pad:
                zpad = jnp.zeros((C_in, pad), jnp.bfloat16)
                s1[:, :pad] = zpad
                s1[:, pad + L_in:] = zpad
            acc = None
            for t in range(K):                          # static unroll (taps)
                prt = jnp.dot(w1[t], s1[:, t * d:t * d + L1],
                              preferred_element_type=jnp.float32)
                acc = prt if acc is None else acc + prt
            h = _gelu(acc + b1[...])                    # (C_out, L1) f32

            # ---- conv2 (+ folded BN2) + GELU --------------------------------
            s2[:, pad:pad + L1] = h.astype(jnp.bfloat16)
            if pad:
                s2[:, :pad] = jnp.zeros((C_out, pad), jnp.bfloat16)
            if W > L1:
                s2[:, pad + L1:] = jnp.zeros((C_out, W - L1), jnp.bfloat16)
            acc = None
            for t in range(K):
                prt = jnp.dot(w2[t], s2[:, t * d:t * d + W],
                              preferred_element_type=jnp.float32)
                acc = prt if acc is None else acc + prt
            y = _gelu(acc + b2[...])                    # (C_out, W) f32

            # ---- residual: optional 1x1 conv, linear interp (matmul),
            #      add + GELU -------------------------------------------------
            if m["has_ds"]:
                r = jnp.dot(wd[...], ab,
                            preferred_element_type=jnp.float32) + bd[...]
            else:
                r = a[:C_out, :]                        # identity (C_in == C_out)
            res = jnp.dot(r.astype(jnp.bfloat16), mm[...],
                          preferred_element_type=jnp.float32)   # (C_out, W)
            a = _gelu(y + res)                          # next layer's input

        # single unmasked lane-dense full-block store (tail is don't-care,
        # cropped in the wrapper).
        o_ref[0] = a.astype(o_ref.dtype)

    return kernel


def temporal_conv_net(x, layer_params, kernel_size=3):
    """Eval-mode TCN forward.  x: (N, C_in, L) f32 (PyTorch NCL layout)."""
    N, C_in0, L0 = x.shape
    K = kernel_size
    n_layers = len(layer_params)

    # One-time zero pad of the input channels to a sublane multiple; matching
    # weight columns are zero-padded, so results are unchanged.  The identity
    # residual slice a[:C_out] only ever reads the real channels.
    C0_pad = _round_up(C_in0, SUBLANE)
    if C0_pad != C_in0:
        x = jnp.pad(x, ((0, 0), (0, C0_pad - C_in0), (0, 0)))

    metas, operands, op_specs, scratch_shapes = [], [], [], []
    scratch_bytes = 0
    L_in, C_in_arr = L0, C0_pad
    for i, p in enumerate(layer_params):
        d = 2 ** i
        pad = (K - 1) * d
        L1, L2 = L_in + pad, L_in + 2 * pad
        C_out, C_in_true = p["w1"].shape[1], p["w1"].shape[2]
        last = i == n_layers - 1
        W = _round_up(L2, LANE) if last else L2         # lane-dense last layer

        w1, b1 = _fold_bn(p["w1"], p["b1"], p["g1"], p["be1"], p["m1"], p["v1"])
        w2, b2 = _fold_bn(p["w2"], p["b2"], p["g2"], p["be2"], p["m2"], p["v2"])
        if C_in_arr > C_in_true:
            w1 = jnp.pad(w1, ((0, 0), (0, 0), (0, C_in_arr - C_in_true)))
        has_ds = p["wd"] is not None
        lay_ops = [w1.astype(jnp.bfloat16), b1,
                   w2.astype(jnp.bfloat16), b2,
                   _interp_matrix(L_in, L2, W)]
        if has_ds:
            wd = p["wd"][0]
            if C_in_arr > C_in_true:
                wd = jnp.pad(wd, ((0, 0), (0, C_in_arr - C_in_true)))
            lay_ops += [wd.astype(jnp.bfloat16), p["bd"]]
        operands += lay_ops
        op_specs += [_const_spec(a) for a in lay_ops]

        s1_shape = (C_in_arr, L_in + 2 * pad)           # conv1 padded input
        s2_shape = (C_out, pad + W)                     # conv2 padded input
        scratch_shapes += [pltpu.VMEM(s1_shape, jnp.bfloat16),
                           pltpu.VMEM(s2_shape, jnp.bfloat16)]
        scratch_bytes += 2 * (s1_shape[0] * s1_shape[1]
                              + s2_shape[0] * s2_shape[1])

        metas.append(dict(d=d, pad=pad, L_in=L_in, L1=L1, L2=L2, W=W,
                          C_in=C_in_arr, C_out=C_out, has_ds=has_ds))
        L_in, C_in_arr = L2, C_out

    C_last, L_final, W_final = metas[-1]["C_out"], metas[-1]["L2"], metas[-1]["W"]

    # VMEM budget (per-generation safe): double-buffered in/out activation
    # blocks + resident weights (x2 for pipelining copies) + staging scratch.
    est = (2 * C0_pad * L0 * 4 + 2 * C_last * W_final * 4
           + 2 * sum(int(a.size) * a.dtype.itemsize for a in operands)
           + scratch_bytes)
    vmem_limit = int(min(max(2 * est, 32 * 1024 * 1024), 48 * 1024 * 1024))

    kernel = _make_tcn_kernel(metas, len(operands), K)
    out = pl.pallas_call(
        kernel,
        out_shape=jax.ShapeDtypeStruct((N, C_last, W_final), x.dtype),
        grid=(N,),
        in_specs=[pl.BlockSpec((1, C0_pad, L0), lambda n: (n, 0, 0))] + op_specs,
        out_specs=pl.BlockSpec((1, C_last, W_final), lambda n: (n, 0, 0)),
        scratch_shapes=scratch_shapes,
        compiler_params=pltpu.CompilerParams(
            dimension_semantics=("parallel",),          # batch across TCs (v7x)
            vmem_limit_bytes=vmem_limit),
    )(x, *operands)
    return out[..., :L_final]                           # crop the lane padding


# ----------------------------------------------------------------------------
# Deterministic parameter initialization (shapes follow the PyTorch module)
# ----------------------------------------------------------------------------
def init_tcn_params(key, num_inputs, num_channels, kernel_size):
    params = []
    for i, out_c in enumerate(num_channels):
        in_c = num_inputs if i == 0 else num_channels[i - 1]
        key, *ks = jax.random.split(key, 15)
        p = {}

        s1 = 1.0 / math.sqrt(in_c * kernel_size)
        p["w1"] = jax.random.uniform(ks[0], (kernel_size, out_c, in_c),
                                     jnp.float32, -s1, s1)
        p["b1"] = jax.random.uniform(ks[1], (out_c, 1), jnp.float32, -s1, s1)
        p["g1"] = 1.0 + 0.1 * jax.random.normal(ks[2], (out_c, 1), jnp.float32)
        p["be1"] = 0.1 * jax.random.normal(ks[3], (out_c, 1), jnp.float32)
        p["m1"] = 0.1 * jax.random.normal(ks[4], (out_c, 1), jnp.float32)
        p["v1"] = 1.0 + 0.1 * jnp.abs(jax.random.normal(ks[5], (out_c, 1),
                                                        jnp.float32))

        s2 = 1.0 / math.sqrt(out_c * kernel_size)
        p["w2"] = jax.random.uniform(ks[6], (kernel_size, out_c, out_c),
                                     jnp.float32, -s2, s2)
        p["b2"] = jax.random.uniform(ks[7], (out_c, 1), jnp.float32, -s2, s2)
        p["g2"] = 1.0 + 0.1 * jax.random.normal(ks[8], (out_c, 1), jnp.float32)
        p["be2"] = 0.1 * jax.random.normal(ks[9], (out_c, 1), jnp.float32)
        p["m2"] = 0.1 * jax.random.normal(ks[10], (out_c, 1), jnp.float32)
        p["v2"] = 1.0 + 0.1 * jnp.abs(jax.random.normal(ks[11], (out_c, 1),
                                                        jnp.float32))

        if in_c != out_c:
            sd = 1.0 / math.sqrt(in_c)
            p["wd"] = jax.random.uniform(ks[12], (1, out_c, in_c),
                                         jnp.float32, -sd, sd)
            p["bd"] = jax.random.uniform(ks[13], (out_c, 1), jnp.float32, -sd, sd)
        else:
            p["wd"] = None
            p["bd"] = None
        params.append(p)
    return params


# ----------------------------------------------------------------------------
if __name__ == "__main__":
    key = jax.random.PRNGKey(0)
    k_param, k_x = jax.random.split(key)

    num_inputs = 4
    num_channels = (8, 16)
    kernel_size = 3

    # x: (batch=2, channels=4, length=16), NCL like PyTorch Conv1d input.
    x = jax.random.normal(k_x, (2, num_inputs, 16), jnp.float32)
    params = init_tcn_params(k_param, num_inputs, num_channels, kernel_size)

    tcn = jax.jit(lambda xx, pp: temporal_conv_net(xx, pp,
                                                   kernel_size=kernel_size))
    out = jax.block_until_ready(tcn(x, params))

    # Each block grows length by 2*(k-1)*dilation (no Chomp1d in the reference):
    # 16 -> 20 -> 28, channels end at num_channels[-1] = 16.
    assert out.shape == (2, num_channels[-1], 28), out.shape
    assert out.dtype == jnp.float32
    assert bool(jnp.all(jnp.isfinite(out)))

    print("KERNEL_OK")
</pallas_src>

<mosaic_0001>
module attributes {stable_mosaic.version = 11 : i64} {
  func.func @kernel(%arg0: i32, %arg1: memref<1x8x16xf32, #tpu.memory_space<vmem>>, %arg2: memref<3x8x8xbf16, #tpu.memory_space<vmem>>, %arg3: memref<8x1xf32, #tpu.memory_space<vmem>>, %arg4: memref<3x8x8xbf16, #tpu.memory_space<vmem>>, %arg5: memref<8x1xf32, #tpu.memory_space<vmem>>, %arg6: memref<16x20xbf16, #tpu.memory_space<vmem>>, %arg7: memref<8x8xbf16, #tpu.memory_space<vmem>>, %arg8: memref<8x1xf32, #tpu.memory_space<vmem>>, %arg9: memref<3x16x8xbf16, #tpu.memory_space<vmem>>, %arg10: memref<16x1xf32, #tpu.memory_space<vmem>>, %arg11: memref<3x16x16xbf16, #tpu.memory_space<vmem>>, %arg12: memref<16x1xf32, #tpu.memory_space<vmem>>, %arg13: memref<20x128xbf16, #tpu.memory_space<vmem>>, %arg14: memref<16x8xbf16, #tpu.memory_space<vmem>>, %arg15: memref<16x1xf32, #tpu.memory_space<vmem>>, %arg16: memref<1x16x128xf32, #tpu.memory_space<vmem>>, %arg17: memref<8x20xbf16, #tpu.memory_space<vmem>>, %arg18: memref<8x22xbf16, #tpu.memory_space<vmem>>, %arg19: memref<8x28xbf16, #tpu.memory_space<vmem>>, %arg20: memref<16x132xbf16, #tpu.memory_space<vmem>>) attributes {dimension_semantics = [#tpu.dimension_semantics<parallel>], iteration_bounds = array<i64: 2>, scalar_prefetch = 0 : i64, scratch_operands = 4 : i64, tpu.core_type = #tpu.core_type<tc>, window_params = [{transform_indices = @transform_0, window_bounds = array<i64: 1, 8, 16>}, {pipeline_mode = #tpu.pipeline_mode<synchronous>, transform_indices = @transform_1, window_bounds = array<i64: 3, 8, 8>}, {pipeline_mode = #tpu.pipeline_mode<synchronous>, transform_indices = @transform_2, window_bounds = array<i64: 8, 1>}, {pipeline_mode = #tpu.pipeline_mode<synchronous>, transform_indices = @transform_3, window_bounds = array<i64: 3, 8, 8>}, {pipeline_mode = #tpu.pipeline_mode<synchronous>, transform_indices = @transform_4, window_bounds = array<i64: 8, 1>}, {pipeline_mode = #tpu.pipeline_mode<synchronous>, transform_indices = @transform_5, window_bounds = array<i64: 16, 20>}, {pipeline_mode = #tpu.pipeline_mode<synchronous>, transform_indices = @transform_6, window_bounds = array<i64: 8, 8>}, {pipeline_mode = #tpu.pipeline_mode<synchronous>, transform_indices = @transform_7, window_bounds = array<i64: 8, 1>}, {pipeline_mode = #tpu.pipeline_mode<synchronous>, transform_indices = @transform_8, window_bounds = array<i64: 3, 16, 8>}, {pipeline_mode = #tpu.pipeline_mode<synchronous>, transform_indices = @transform_9, window_bounds = array<i64: 16, 1>}, {pipeline_mode = #tpu.pipeline_mode<synchronous>, transform_indices = @transform_10, window_bounds = array<i64: 3, 16, 16>}, {pipeline_mode = #tpu.pipeline_mode<synchronous>, transform_indices = @transform_11, window_bounds = array<i64: 16, 1>}, {pipeline_mode = #tpu.pipeline_mode<synchronous>, transform_indices = @transform_12, window_bounds = array<i64: 20, 128>}, {pipeline_mode = #tpu.pipeline_mode<synchronous>, transform_indices = @transform_13, window_bounds = array<i64: 16, 8>}, {pipeline_mode = #tpu.pipeline_mode<synchronous>, transform_indices = @transform_14, window_bounds = array<i64: 16, 1>}, {transform_indices = @transform_15, window_bounds = array<i64: 1, 16, 128>}]} {
    %c0 = arith.constant 0 : index
    %c0_0 = arith.constant 0 : index
    %c0_1 = arith.constant 0 : index
    %0 = vector.load %arg1[%c0, %c0_0, %c0_1] : memref<1x8x16xf32, #tpu.memory_space<vmem>>, vector<1x8x16xf32>
    %1 = vector.shape_cast %0 : vector<1x8x16xf32> to vector<8x16xf32>
    %2 = arith.truncf %1 : vector<8x16xf32> to vector<8x16xbf16>
    %c0_2 = arith.constant 0 : index
    %c2 = arith.constant 2 : index
    %3 = vector.load %arg17[%c0_2, %c2] : memref<8x20xbf16, #tpu.memory_space<vmem>>, vector<8x16xbf16>
    tpu.vector_store %arg17[%c0_2, %c2], %2 {strides = array<i32>} : memref<8x20xbf16, #tpu.memory_space<vmem>>, vector<8x16xbf16>,
    %cst = arith.constant 0.000000e+00 : bf16
    %4 = vector.broadcast %cst : bf16 to vector<8x2xbf16>
    %c0_3 = arith.constant 0 : index
    %c0_4 = arith.constant 0 : index
    %5 = vector.load %arg17[%c0_3, %c0_4] : memref<8x20xbf16, #tpu.memory_space<vmem>>, vector<8x2xbf16>
    tpu.vector_store %arg17[%c0_3, %c0_4], %4 {strides = array<i32>} : memref<8x20xbf16, #tpu.memory_space<vmem>>, vector<8x2xbf16>,
    %c0_5 = arith.constant 0 : index
    %c18 = arith.constant 18 : index
    %6 = vector.load %arg17[%c0_5, %c18] : memref<8x20xbf16, #tpu.memory_space<vmem>>, vector<8x2xbf16>
    tpu.vector_store %arg17[%c0_5, %c18], %4 {strides = array<i32>} : memref<8x20xbf16, #tpu.memory_space<vmem>>, vector<8x2xbf16>,
    %c0_6 = arith.constant 0 : index
    %c0_7 = arith.constant 0 : index
    %c0_8 = arith.constant 0 : index
    %7 = vector.load %arg2[%c0_6, %c0_7, %c0_8] : memref<3x8x8xbf16, #tpu.memory_space<vmem>>, vector<1x8x8xbf16>
    %8 = vector.shape_cast %7 : vector<1x8x8xbf16> to vector<8x8xbf16>
    %c0_9 = arith.constant 0 : index
    %c0_10 = arith.constant 0 : index
    %9 = vector.load %arg17[%c0_9, %c0_10] : memref<8x20xbf16, #tpu.memory_space<vmem>>, vector<8x18xbf16>
    %cst_11 = arith.constant dense<0.000000e+00> : vector<8x18xf32>
    %10 = tpu.matmul %8, %9, %cst_11 {dimension_numbers = #tpu.dot_dimension_numbers<[1], [0], [0], [1], [0, 0, 1, 1], [], []>} : vector<8x8xbf16>, vector<8x18xbf16>, vector<8x18xf32> -> vector<8x18xf32>
    %c1 = arith.constant 1 : index
    %c0_12 = arith.constant 0 : index
    %c0_13 = arith.constant 0 : index
    %11 = vector.load %arg2[%c1, %c0_12, %c0_13] : memref<3x8x8xbf16, #tpu.memory_space<vmem>>, vector<1x8x8xbf16>
    %12 = vector.shape_cast %11 : vector<1x8x8xbf16> to vector<8x8xbf16>
    %c0_14 = arith.constant 0 : index
    %c1_15 = arith.constant 1 : index
    %13 = vector.load %arg17[%c0_14, %c1_15] : memref<8x20xbf16, #tpu.memory_space<vmem>>, vector<8x18xbf16>
    %cst_16 = arith.constant dense<0.000000e+00> : vector<8x18xf32>
    %14 = tpu.matmul %12, %13, %cst_16 {dimension_numbers = #tpu.dot_dimension_numbers<[1], [0], [0], [1], [0, 0, 1, 1], [], []>} : vector<8x8xbf16>, vector<8x18xbf16>, vector<8x18xf32> -> vector<8x18xf32>
    %15 = arith.addf %10, %14 : vector<8x18xf32>
    %c2_17 = arith.constant 2 : index
    %c0_18 = arith.constant 0 : index
    %c0_19 = arith.constant 0 : index
    %16 = vector.load %arg2[%c2_17, %c0_18, %c0_19] : memref<3x8x8xbf16, #tpu.memory_space<vmem>>, vector<1x8x8xbf16>
    %17 = vector.shape_cast %16 : vector<1x8x8xbf16> to vector<8x8xbf16>
    %c0_20 = arith.constant 0 : index
    %c2_21 = arith.constant 2 : index
    %18 = vector.load %arg17[%c0_20, %c2_21] : memref<8x20xbf16, #tpu.memory_space<vmem>>, vector<8x18xbf16>
    %cst_22 = arith.constant dense<0.000000e+00> : vector<8x18xf32>
    %19 = tpu.matmul %17, %18, %cst_22 {dimension_numbers = #tpu.dot_dimension_numbers<[1], [0], [0], [1], [0, 0, 1, 1], [], []>} : vector<8x8xbf16>, vector<8x18xbf16>, vector<8x18xf32> -> vector<8x18xf32>
    %20 = arith.addf %15, %19 : vector<8x18xf32>
    %c0_23 = arith.constant 0 : index
    %c0_24 = arith.constant 0 : index
    %21 = vector.load %arg3[%c0_23, %c0_24] : memref<8x1xf32, #tpu.memory_space<vmem>>, vector<8x1xf32>
    %22 = vector.broadcast %21 : vector<8x1xf32> to vector<8x18xf32>
    %23 = arith.addf %20, %22 : vector<8x18xf32>
    %cst_25 = arith.constant 5.000000e-01 : f32
    %24 = vector.broadcast %cst_25 : f32 to vector<8x18xf32>
    %25 = arith.mulf %24, %23 : vector<8x18xf32>
    %cst_26 = arith.constant 4.471500e-02 : f32
    %26 = vector.broadcast %cst_26 : f32 to vector<8x18xf32>
    %27 = arith.mulf %26, %23 : vector<8x18xf32>
    %28 = arith.mulf %27, %23 : vector<8x18xf32>
    %29 = arith.mulf %28, %23 : vector<8x18xf32>
    %30 = arith.addf %23, %29 : vector<8x18xf32>
    %cst_27 = arith.constant 0.797884583 : f32
    %31 = vector.broadcast %cst_27 : f32 to vector<8x18xf32>
    %32 = arith.mulf %31, %30 : vector<8x18xf32>
    %33 = math.tanh %32 : vector<8x18xf32>
    %cst_28 = arith.constant 1.000000e+00 : f32
    %34 = vector.broadcast %cst_28 : f32 to vector<8x18xf32>
    %35 = arith.addf %34, %33 : vector<8x18xf32>
    %36 = arith.mulf %25, %35 : vector<8x18xf32>
    %37 = arith.truncf %36 : vector<8x18xf32> to vector<8x18xbf16>
    %c0_29 = arith.constant 0 : index
    %c2_30 = arith.constant 2 : index
    %38 = vector.load %arg18[%c0_29, %c2_30] : memref<8x22xbf16, #tpu.memory_space<vmem>>, vector<8x18xbf16>
    tpu.vector_store %arg18[%c0_29, %c2_30], %37 {strides = array<i32>} : memref<8x22xbf16, #tpu.memory_space<vmem>>, vector<8x18xbf16>,
    %cst_31 = arith.constant 0.000000e+00 : bf16
    %39 = vector.broadcast %cst_31 : bf16 to vector<8x2xbf16>
    %c0_32 = arith.constant 0 : index
    %c0_33 = arith.constant 0 : index
    %40 = vector.load %arg18[%c0_32, %c0_33] : memref<8x22xbf16, #tpu.memory_space<vmem>>, vector<8x2xbf16>
    tpu.vector_store %arg18[%c0_32, %c0_33], %39 {strides = array<i32>} : memref<8x22xbf16, #tpu.memory_space<vmem>>, vector<8x2xbf16>,
    %cst_34 = arith.constant 0.000000e+00 : bf16
    %41 = vector.broadcast %cst_34 : bf16 to vector<8x2xbf16>
    %c0_35 = arith.constant 0 : index
    %c20 = arith.constant 20 : index
    %42 = vector.load %arg18[%c0_35, %c20] : memref<8x22xbf16, #tpu.memory_space<vmem>>, vector<8x2xbf16>
    tpu.vector_store %arg18[%c0_35, %c20], %41 {strides = array<i32>} : memref<8x22xbf16, #tpu.memory_space<vmem>>, vector<8x2xbf16>,
    %c0_36 = arith.constant 0 : index
    %c0_37 = arith.constant 0 : index
    %c0_38 = arith.constant 0 : index
    %43 = vector.load %arg4[%c0_36, %c0_37, %c0_38] : memref<3x8x8xbf16, #tpu.memory_space<vmem>>, vector<1x8x8xbf16>
    %44 = vector.shape_cast %43 : vector<1x8x8xbf16> to vector<8x8xbf16>
    %c0_39 = arith.constant 0 : index
    %c0_40 = arith.constant 0 : index
    %45 = vector.load %arg18[%c0_39, %c0_40] : memref<8x22xbf16, #tpu.memory_space<vmem>>, vector<8x20xbf16>
    %cst_41 = arith.constant dense<0.000000e+00> : vector<8x20xf32>
    %46 = tpu.matmul %44, %45, %cst_41 {dimension_numbers = #tpu.dot_dimension_numbers<[1], [0], [0], [1], [0, 0, 1, 1], [], []>} : vector<8x8xbf16>, vector<8x20xbf16>, vector<8x20xf32> -> vector<8x20xf32>
    %c1_42 = arith.constant 1 : index
    %c0_43 = arith.constant 0 : index
    %c0_44 = arith.constant 0 : index
    %47 = vector.load %arg4[%c1_42, %c0_43, %c0_44] : memref<3x8x8xbf16, #tpu.memory_space<vmem>>, vector<1x8x8xbf16>
    %48 = vector.shape_cast %47 : vector<1x8x8xbf16> to vector<8x8xbf16>
    %c0_45 = arith.constant 0 : index
    %c1_46 = arith.constant 1 : index
    %49 = vector.load %arg18[%c0_45, %c1_46] : memref<8x22xbf16, #tpu.memory_space<vmem>>, vector<8x20xbf16>
    %cst_47 = arith.constant dense<0.000000e+00> : vector<8x20xf32>
    %50 = tpu.matmul %48, %49, %cst_47 {dimension_numbers = #tpu.dot_dimension_numbers<[1], [0], [0], [1], [0, 0, 1, 1], [], []>} : vector<8x8xbf16>, vector<8x20xbf16>, vector<8x20xf32> -> vector<8x20xf32>
    %51 = arith.addf %46, %50 : vector<8x20xf32>
    %c2_48 = arith.constant 2 : index
    %c0_49 = arith.constant 0 : index
    %c0_50 = arith.constant 0 : index
    %52 = vector.load %arg4[%c2_48, %c0_49, %c0_50] : memref<3x8x8xbf16, #tpu.memory_space<vmem>>, vector<1x8x8xbf16>
    %53 = vector.shape_cast %52 : vector<1x8x8xbf16> to vector<8x8xbf16>
    %c0_51 = arith.constant 0 : index
    %c2_52 = arith.constant 2 : index
    %54 = vector.load %arg18[%c0_51, %c2_52] : memref<8x22xbf16, #tpu.memory_space<vmem>>, vector<8x20xbf16>
    %cst_53 = arith.constant dense<0.000000e+00> : vector<8x20xf32>
    %55 = tpu.matmul %53, %54, %cst_53 {dimension_numbers = #tpu.dot_dimension_numbers<[1], [0], [0], [1], [0, 0, 1, 1], [], []>} : vector<8x8xbf16>, vector<8x20xbf16>, vector<8x20xf32> -> vector<8x20xf32>
    %56 = arith.addf %51, %55 : vector<8x20xf32>
    %c0_54 = arith.constant 0 : index
    %c0_55 = arith.constant 0 : index
    %57 = vector.load %arg5[%c0_54, %c0_55] : memref<8x1xf32, #tpu.memory_space<vmem>>, vector<8x1xf32>
    %58 = vector.broadcast %57 : vector<8x1xf32> to vector<8x20xf32>
    %59 = arith.addf %56, %58 : vector<8x20xf32>
    %cst_56 = arith.constant 5.000000e-01 : f32
    %60 = vector.broadcast %cst_56 : f32 to vector<8x20xf32>
    %61 = arith.mulf %60, %59 : vector<8x20xf32>
    %cst_57 = arith.constant 4.471500e-02 : f32
    %62 = vector.broadcast %cst_57 : f32 to vector<8x20xf32>
    %63 = arith.mulf %62, %59 : vector<8x20xf32>
    %64 = arith.mulf %63, %59 : vector<8x20xf32>
    %65 = arith.mulf %64, %59 : vector<8x20xf32>
    %66 = arith.addf %59, %65 : vector<8x20xf32>
    %cst_58 = arith.constant 0.797884583 : f32
    %67 = vector.broadcast %cst_58 : f32 to vector<8x20xf32>
    %68 = arith.mulf %67, %66 : vector<8x20xf32>
    %69 = math.tanh %68 : vector<8x20xf32>
    %cst_59 = arith.constant 1.000000e+00 : f32
    %70 = vector.broadcast %cst_59 : f32 to vector<8x20xf32>
    %71 = arith.addf %70, %69 : vector<8x20xf32>
    %72 = arith.mulf %61, %71 : vector<8x20xf32>
    %c0_60 = arith.constant 0 : index
    %c0_61 = arith.constant 0 : index
    %73 = vector.load %arg7[%c0_60, %c0_61] : memref<8x8xbf16, #tpu.memory_space<vmem>>, vector<8x8xbf16>
    %cst_62 = arith.constant dense<0.000000e+00> : vector<8x16xf32>
    %74 = tpu.matmul %73, %2, %cst_62 {dimension_numbers = #tpu.dot_dimension_numbers<[1], [0], [0], [1], [0, 0, 1, 1], [], []>} : vector<8x8xbf16>, vector<8x16xbf16>, vector<8x16xf32> -> vector<8x16xf32>
    %c0_63 = arith.constant 0 : index
    %c0_64 = arith.constant 0 : index
    %75 = vector.load %arg8[%c0_63, %c0_64] : memref<8x1xf32, #tpu.memory_space<vmem>>, vector<8x1xf32>
    %76 = vector.broadcast %75 : vector<8x1xf32> to vector<8x16xf32>
    %77 = arith.addf %74, %76 : vector<8x16xf32>
    %78 = arith.truncf %77 : vector<8x16xf32> to vector<8x16xbf16>
    %c0_65 = arith.constant 0 : index
    %c0_66 = arith.constant 0 : index
    %79 = vector.load %arg6[%c0_65, %c0_66] : memref<16x20xbf16, #tpu.memory_space<vmem>>, vector<16x20xbf16>
    %cst_67 = arith.constant dense<0.000000e+00> : vector<8x20xf32>
    %80 = tpu.matmul %78, %79, %cst_67 {dimension_numbers = #tpu.dot_dimension_numbers<[1], [0], [0], [1], [0, 0, 1, 1], [], []>} : vector<8x16xbf16>, vector<16x20xbf16>, vector<8x20xf32> -> vector<8x20xf32>
    %81 = arith.addf %72, %80 : vector<8x20xf32>
    %cst_68 = arith.constant 5.000000e-01 : f32
    %82 = vector.broadcast %cst_68 : f32 to vector<8x20xf32>
    %83 = arith.mulf %82, %81 : vector<8x20xf32>
    %cst_69 = arith.constant 4.471500e-02 : f32
    %84 = vector.broadcast %cst_69 : f32 to vector<8x20xf32>
    %85 = arith.mulf %84, %81 : vector<8x20xf32>
    %86 = arith.mulf %85, %81 : vector<8x20xf32>
    %87 = arith.mulf %86, %81 : vector<8x20xf32>
    %88 = arith.addf %81, %87 : vector<8x20xf32>
    %cst_70 = arith.constant 0.797884583 : f32
    %89 = vector.broadcast %cst_70 : f32 to vector<8x20xf32>
    %90 = arith.mulf %89, %88 : vector<8x20xf32>
    %91 = math.tanh %90 : vector<8x20xf32>
    %cst_71 = arith.constant 1.000000e+00 : f32
    %92 = vector.broadcast %cst_71 : f32 to vector<8x20xf32>
    %93 = arith.addf %92, %91 : vector<8x20xf32>
    %94 = arith.mulf %83, %93 : vector<8x20xf32>
    %95 = arith.truncf %94 : vector<8x20xf32> to vector<8x20xbf16>
    %c0_72 = arith.constant 0 : index
    %c4 = arith.constant 4 : index
    %96 = vector.load %arg19[%c0_72, %c4] : memref<8x28xbf16, #tpu.memory_space<vmem>>, vector<8x20xbf16>
    tpu.vector_store %arg19[%c0_72, %c4], %95 {strides = array<i32>} : memref<8x28xbf16, #tpu.memory_space<vmem>>, vector<8x20xbf16>,
    %cst_73 = arith.constant 0.000000e+00 : bf16
    %97 = vector.broadcast %cst_73 : bf16 to vector<8x4xbf16>
    %c0_74 = arith.constant 0 : index
    %c0_75 = arith.constant 0 : index
    %98 = vector.load %arg19[%c0_74, %c0_75] : memref<8x28xbf16, #tpu.memory_space<vmem>>, vector<8x4xbf16>
    tpu.vector_store %arg19[%c0_74, %c0_75], %97 {strides = array<i32>} : memref<8x28xbf16, #tpu.memory_space<vmem>>, vector<8x4xbf16>,
    %c0_76 = arith.constant 0 : index
    %c24 = arith.constant 24 : index
    %99 = vector.load %arg19[%c0_76, %c24] : memref<8x28xbf16, #tpu.memory_space<vmem>>, vector<8x4xbf16>
    tpu.vector_store %arg19[%c0_76, %c24], %97 {strides = array<i32>} : memref<8x28xbf16, #tpu.memory_space<vmem>>, vector<8x4xbf16>,
    %c0_77 = arith.constant 0 : index
    %c0_78 = arith.constant 0 : index
    %c0_79 = arith.constant 0 : index
    %100 = vector.load %arg9[%c0_77, %c0_78, %c0_79] : memref<3x16x8xbf16, #tpu.memory_space<vmem>>, vector<1x16x8xbf16>
    %101 = vector.shape_cast %100 : vector<1x16x8xbf16> to vector<16x8xbf16>
    %c0_80 = arith.constant 0 : index
    %c0_81 = arith.constant 0 : index
    %102 = vector.load %arg19[%c0_80, %c0_81] : memref<8x28xbf16, #tpu.memory_space<vmem>>, vector<8x24xbf16>
    %cst_82 = arith.constant dense<0.000000e+00> : vector<16x24xf32>
    %103 = tpu.matmul %101, %102, %cst_82 {dimension_numbers = #tpu.dot_dimension_numbers<[1], [0], [0], [1], [0, 0, 1, 1], [], []>} : vector<16x8xbf16>, vector<8x24xbf16>, vector<16x24xf32> -> vector<16x24xf32>
    %c1_83 = arith.constant 1 : index
    %c0_84 = arith.constant 0 : index
    %c0_85 = arith.constant 0 : index
    %104 = vector.load %arg9[%c1_83, %c0_84, %c0_85] : memref<3x16x8xbf16, #tpu.memory_space<vmem>>, vector<1x16x8xbf16>
    %105 = vector.shape_cast %104 : vector<1x16x8xbf16> to vector<16x8xbf16>
    %c0_86 = arith.constant 0 : index
    %c2_87 = arith.constant 2 : index
    %106 = vector.load %arg19[%c0_86, %c2_87] : memref<8x28xbf16, #tpu.memory_space<vmem>>, vector<8x24xbf16>
    %cst_88 = arith.constant dense<0.000000e+00> : vector<16x24xf32>
    %107 = tpu.matmul %105, %106, %cst_88 {dimension_numbers = #tpu.dot_dimension_numbers<[1], [0], [0], [1], [0, 0, 1, 1], [], []>} : vector<16x8xbf16>, vector<8x24xbf16>, vector<16x24xf32> -> vector<16x24xf32>
    %108 = arith.addf %103, %107 : vector<16x24xf32>
    %c2_89 = arith.constant 2 : index
    %c0_90 = arith.constant 0 : index
    %c0_91 = arith.constant 0 : index
    %109 = vector.load %arg9[%c2_89, %c0_90, %c0_91] : memref<3x16x8xbf16, #tpu.memory_space<vmem>>, vector<1x16x8xbf16>
    %110 = vector.shape_cast %109 : vector<1x16x8xbf16> to vector<16x8xbf16>
    %c0_92 = arith.constant 0 : index
    %c4_93 = arith.constant 4 : index
    %111 = vector.load %arg19[%c0_92, %c4_93] : memref<8x28xbf16, #tpu.memory_space<vmem>>, vector<8x24xbf16>
    %cst_94 = arith.constant dense<0.000000e+00> : vector<16x24xf32>
    %112 = tpu.matmul %110, %111, %cst_94 {dimension_numbers = #tpu.dot_dimension_numbers<[1], [0], [0], [1], [0, 0, 1, 1], [], []>} : vector<16x8xbf16>, vector<8x24xbf16>, vector<16x24xf32> -> vector<16x24xf32>
    %113 = arith.addf %108, %112 : vector<16x24xf32>
    %c0_95 = arith.constant 0 : index
    %c0_96 = arith.constant 0 : index
    %114 = vector.load %arg10[%c0_95, %c0_96] : memref<16x1xf32, #tpu.memory_space<vmem>>, vector<16x1xf32>
    %115 = vector.broadcast %114 : vector<16x1xf32> to vector<16x24xf32>
    %116 = arith.addf %113, %115 : vector<16x24xf32>
    %cst_97 = arith.constant 5.000000e-01 : f32
    %117 = vector.broadcast %cst_97 : f32 to vector<16x24xf32>
    %118 = arith.mulf %117, %116 : vector<16x24xf32>
    %cst_98 = arith.constant 4.471500e-02 : f32
    %119 = vector.broadcast %cst_98 : f32 to vector<16x24xf32>
    %120 = arith.mulf %119, %116 : vector<16x24xf32>
    %121 = arith.mulf %120, %116 : vector<16x24xf32>
    %122 = arith.mulf %121, %116 : vector<16x24xf32>
    %123 = arith.addf %116, %122 : vector<16x24xf32>
    %cst_99 = arith.constant 0.797884583 : f32
    %124 = vector.broadcast %cst_99 : f32 to vector<16x24xf32>
    %125 = arith.mulf %124, %123 : vector<16x24xf32>
    %126 = math.tanh %125 : vector<16x24xf32>
    %cst_100 = arith.constant 1.000000e+00 : f32
    %127 = vector.broadcast %cst_100 : f32 to vector<16x24xf32>
    %128 = arith.addf %127, %126 : vector<16x24xf32>
    %129 = arith.mulf %118, %128 : vector<16x24xf32>
    %130 = arith.truncf %129 : vector<16x24xf32> to vector<16x24xbf16>
    %c0_101 = arith.constant 0 : index
    %c4_102 = arith.constant 4 : index
    %131 = vector.load %arg20[%c0_101, %c4_102] : memref<16x132xbf16, #tpu.memory_space<vmem>>, vector<16x24xbf16>
    tpu.vector_store %arg20[%c0_101, %c4_102], %130 {strides = array<i32>} : memref<16x132xbf16, #tpu.memory_space<vmem>>, vector<16x24xbf16>,
    %cst_103 = arith.constant 0.000000e+00 : bf16
    %132 = vector.broadcast %cst_103 : bf16 to vector<16x4xbf16>
    %c0_104 = arith.constant 0 : index
    %c0_105 = arith.constant 0 : index
    %133 = vector.load %arg20[%c0_104, %c0_105] : memref<16x132xbf16, #tpu.memory_space<vmem>>, vector<16x4xbf16>
    tpu.vector_store %arg20[%c0_104, %c0_105], %132 {strides = array<i32>} : memref<16x132xbf16, #tpu.memory_space<vmem>>, vector<16x4xbf16>,
    %cst_106 = arith.constant 0.000000e+00 : bf16
    %134 = vector.broadcast %cst_106 : bf16 to vector<16x104xbf16>
    %c0_107 = arith.constant 0 : index
    %c28 = arith.constant 28 : index
    %135 = vector.load %arg20[%c0_107, %c28] : memref<16x132xbf16, #tpu.memory_space<vmem>>, vector<16x104xbf16>
    tpu.vector_store %arg20[%c0_107, %c28], %134 {strides = array<i32>} : memref<16x132xbf16, #tpu.memory_space<vmem>>, vector<16x104xbf16>,
    %c0_108 = arith.constant 0 : index
    %c0_109 = arith.constant 0 : index
    %c0_110 = arith.constant 0 : index
    %136 = vector.load %arg11[%c0_108, %c0_109, %c0_110] : memref<3x16x16xbf16, #tpu.memory_space<vmem>>, vector<1x16x16xbf16>
    %137 = vector.shape_cast %136 : vector<1x16x16xbf16> to vector<16x16xbf16>
    %c0_111 = arith.constant 0 : index
    %c0_112 = arith.constant 0 : index
    %138 = vector.load %arg20[%c0_111, %c0_112] : memref<16x132xbf16, #tpu.memory_space<vmem>>, vector<16x128xbf16>
    %cst_113 = arith.constant dense<0.000000e+00> : vector<16x128xf32>
    %139 = tpu.matmul %137, %138, %cst_113 {dimension_numbers = #tpu.dot_dimension_numbers<[1], [0], [0], [1], [0, 0, 1, 1], [], []>} : vector<16x16xbf16>, vector<16x128xbf16>, vector<16x128xf32> -> vector<16x128xf32>
    %c1_114 = arith.constant 1 : index
    %c0_115 = arith.constant 0 : index
    %c0_116 = arith.constant 0 : index
    %140 = vector.load %arg11[%c1_114, %c0_115, %c0_116] : memref<3x16x16xbf16, #tpu.memory_space<vmem>>, vector<1x16x16xbf16>
    %141 = vector.shape_cast %140 : vector<1x16x16xbf16> to vector<16x16xbf16>
    %c0_117 = arith.constant 0 : index
    %c2_118 = arith.constant 2 : index
    %142 = vector.load %arg20[%c0_117, %c2_118] : memref<16x132xbf16, #tpu.memory_space<vmem>>, vector<16x128xbf16>
    %cst_119 = arith.constant dense<0.000000e+00> : vector<16x128xf32>
    %143 = tpu.matmul %141, %142, %cst_119 {dimension_numbers = #tpu.dot_dimension_numbers<[1], [0], [0], [1], [0, 0, 1, 1], [], []>} : vector<16x16xbf16>, vector<16x128xbf16>, vector<16x128xf32> -> vector<16x128xf32>
    %144 = arith.addf %139, %143 : vector<16x128xf32>
    %c2_120 = arith.constant 2 : index
    %c0_121 = arith.constant 0 : index
    %c0_122 = arith.constant 0 : index
    %145 = vector.load %arg11[%c2_120, %c0_121, %c0_122] : memref<3x16x16xbf16, #tpu.memory_space<vmem>>, vector<1x16x16xbf16>
    %146 = vector.shape_cast %145 : vector<1x16x16xbf16> to vector<16x16xbf16>
    %c0_123 = arith.constant 0 : index
    %c4_124 = arith.constant 4 : index
    %147 = vector.load %arg20[%c0_123, %c4_124] : memref<16x132xbf16, #tpu.memory_space<vmem>>, vector<16x128xbf16>
    %cst_125 = arith.constant dense<0.000000e+00> : vector<16x128xf32>
    %148 = tpu.matmul %146, %147, %cst_125 {dimension_numbers = #tpu.dot_dimension_numbers<[1], [0], [0], [1], [0, 0, 1, 1], [], []>} : vector<16x16xbf16>, vector<16x128xbf16>, vector<16x128xf32> -> vector<16x128xf32>
    %149 = arith.addf %144, %148 : vector<16x128xf32>
    %c0_126 = arith.constant 0 : index
    %c0_127 = arith.constant 0 : index
    %150 = vector.load %arg12[%c0_126, %c0_127] : memref<16x1xf32, #tpu.memory_space<vmem>>, vector<16x1xf32>
    %151 = vector.broadcast %150 : vector<16x1xf32> to vector<16x128xf32>
    %152 = arith.addf %149, %151 : vector<16x128xf32>
    %cst_128 = arith.constant 5.000000e-01 : f32
    %153 = vector.broadcast %cst_128 : f32 to vector<16x128xf32>
    %154 = arith.mulf %153, %152 : vector<16x128xf32>
    %cst_129 = arith.constant 4.471500e-02 : f32
    %155 = vector.broadcast %cst_129 : f32 to vector<16x128xf32>
    %156 = arith.mulf %155, %152 : vector<16x128xf32>
    %157 = arith.mulf %156, %152 : vector<16x128xf32>
    %158 = arith.mulf %157, %152 : vector<16x128xf32>
    %159 = arith.addf %152, %158 : vector<16x128xf32>
    %cst_130 = arith.constant 0.797884583 : f32
    %160 = vector.broadcast %cst_130 : f32 to vector<16x128xf32>
    %161 = arith.mulf %160, %159 : vector<16x128xf32>
    %162 = math.tanh %161 : vector<16x128xf32>
    %cst_131 = arith.constant 1.000000e+00 : f32
    %163 = vector.broadcast %cst_131 : f32 to vector<16x128xf32>
    %164 = arith.addf %163, %162 : vector<16x128xf32>
    %165 = arith.mulf %154, %164 : vector<16x128xf32>
    %c0_132 = arith.constant 0 : index
    %c0_133 = arith.constant 0 : index
    %166 = vector.load %arg14[%c0_132, %c0_133] : memref<16x8xbf16, #tpu.memory_space<vmem>>, vector<16x8xbf16>
    %cst_134 = arith.constant dense<0.000000e+00> : vector<16x20xf32>
    %167 = tpu.matmul %166, %95, %cst_134 {dimension_numbers = #tpu.dot_dimension_numbers<[1], [0], [0], [1], [0, 0, 1, 1], [], []>} : vector<16x8xbf16>, vector<8x20xbf16>, vector<16x20xf32> -> vector<16x20xf32>
    %c0_135 = arith.constant 0 : index
    %c0_136 = arith.constant 0 : index
    %168 = vector.load %arg15[%c0_135, %c0_136] : memref<16x1xf32, #tpu.memory_space<vmem>>, vector<16x1xf32>
    %169 = vector.broadcast %168 : vector<16x1xf32> to vector<16x20xf32>
    %170 = arith.addf %167, %169 : vector<16x20xf32>
    %171 = arith.truncf %170 : vector<16x20xf32> to vector<16x20xbf16>
    %c0_137 = arith.constant 0 : index
    %c0_138 = arith.constant 0 : index
    %172 = vector.load %arg13[%c0_137, %c0_138] : memref<20x128xbf16, #tpu.memory_space<vmem>>, vector<20x128xbf16>
    %cst_139 = arith.constant dense<0.000000e+00> : vector<16x128xf32>
    %173 = tpu.matmul %171, %172, %cst_139 {dimension_numbers = #tpu.dot_dimension_numbers<[1], [0], [0], [1], [0, 0, 1, 1], [], []>} : vector<16x20xbf16>, vector<20x128xbf16>, vector<16x128xf32> -> vector<16x128xf32>
    %174 = arith.addf %165, %173 : vector<16x128xf32>
    %cst_140 = arith.constant 5.000000e-01 : f32
    %175 = vector.broadcast %cst_140 : f32 to vector<16x128xf32>
    %176 = arith.mulf %175, %174 : vector<16x128xf32>
    %cst_141 = arith.constant 4.471500e-02 : f32
    %177 = vector.broadcast %cst_141 : f32 to vector<16x128xf32>
    %178 = arith.mulf %177, %174 : vector<16x128xf32>
    %179 = arith.mulf %178, %174 : vector<16x128xf32>
    %180 = arith.mulf %179, %174 : vector<16x128xf32>
    %181 = arith.addf %174, %180 : vector<16x128xf32>
    %cst_142 = arith.constant 0.797884583 : f32
    %182 = vector.broadcast %cst_142 : f32 to vector<16x128xf32>
    %183 = arith.mulf %182, %181 : vector<16x128xf32>
    %184 = math.tanh %183 : vector<16x128xf32>
    %cst_143 = arith.constant 1.000000e+00 : f32
    %185 = vector.broadcast %cst_143 : f32 to vector<16x128xf32>
    %186 = arith.addf %185, %184 : vector<16x128xf32>
    %187 = arith.mulf %176, %186 : vector<16x128xf32>
    %c0_144 = arith.constant 0 : index
    %c0_145 = arith.constant 0 : index
    %c0_146 = arith.constant 0 : index
    %188 = vector.load %arg16[%c0_144, %c0_145, %c0_146] : memref<1x16x128xf32, #tpu.memory_space<vmem>>, vector<1x16x128xf32>
    %189 = vector.shape_cast %188 : vector<1x16x128xf32> to vector<16x128xf32>
    %190 = vector.shape_cast %187 : vector<16x128xf32> to vector<1x16x128xf32>
    tpu.vector_store %arg16[%c0_144, %c0_145, %c0_146], %190 {strides = array<i32>} : memref<1x16x128xf32, #tpu.memory_space<vmem>>, vector<1x16x128xf32>,
    return
  }
  func.func @transform_0(%arg0: i32) -> (i32, i32, i32) {
    %c0_i32 = arith.constant 0 : i32
    %c0_i32_0 = arith.constant 0 : i32
    %c0_i32_1 = arith.constant 0 : i32
    return %arg0, %c0_i32, %c0_i32_0 : i32, i32, i32
  }
  func.func @transform_1(%arg0: i32) -> (i32, i32, i32) {
    %c0_i32 = arith.constant 0 : i32
    %c0_i32_0 = arith.constant 0 : i32
    %c0_i32_1 = arith.constant 0 : i32
    %c0_i32_2 = arith.constant 0 : i32
    return %c0_i32, %c0_i32_0, %c0_i32_1 : i32, i32, i32
  }
  func.func @transform_2(%arg0: i32) -> (i32, i32) {
    %c0_i32 = arith.constant 0 : i32
    %c0_i32_0 = arith.constant 0 : i32
    %c0_i32_1 = arith.constant 0 : i32
    return %c0_i32, %c0_i32_0 : i32, i32
  }
  func.func @transform_3(%arg0: i32) -> (i32, i32, i32) {
    %c0_i32 = arith.constant 0 : i32
    %c0_i32_0 = arith.constant 0 : i32
    %c0_i32_1 = arith.constant 0 : i32
    %c0_i32_2 = arith.constant 0 : i32
    return %c0_i32, %c0_i32_0, %c0_i32_1 : i32, i32, i32
  }
  func.func @transform_4(%arg0: i32) -> (i32, i32) {
    %c0_i32 = arith.constant 0 : i32
    %c0_i32_0 = arith.constant 0 : i32
    %c0_i32_1 = arith.constant 0 : i32
    return %c0_i32, %c0_i32_0 : i32, i32
  }
  func.func @transform_5(%arg0: i32) -> (i32, i32) {
    %c0_i32 = arith.constant 0 : i32
    %c0_i32_0 = arith.constant 0 : i32
    %c0_i32_1 = arith.constant 0 : i32
    return %c0_i32, %c0_i32_0 : i32, i32
  }
  func.func @transform_6(%arg0: i32) -> (i32, i32) {
    %c0_i32 = arith.constant 0 : i32
    %c0_i32_0 = arith.constant 0 : i32
    %c0_i32_1 = arith.constant 0 : i32
    return %c0_i32, %c0_i32_0 : i32, i32
  }
  func.func @transform_7(%arg0: i32) -> (i32, i32) {
    %c0_i32 = arith.constant 0 : i32
    %c0_i32_0 = arith.constant 0 : i32
    %c0_i32_1 = arith.constant 0 : i32
    return %c0_i32, %c0_i32_0 : i32, i32
  }
  func.func @transform_8(%arg0: i32) -> (i32, i32, i32) {
    %c0_i32 = arith.constant 0 : i32
    %c0_i32_0 = arith.constant 0 : i32
    %c0_i32_1 = arith.constant 0 : i32
    %c0_i32_2 = arith.constant 0 : i32
    return %c0_i32, %c0_i32_0, %c0_i32_1 : i32, i32, i32
  }
  func.func @transform_9(%arg0: i32) -> (i32, i32) {
    %c0_i32 = arith.constant 0 : i32
    %c0_i32_0 = arith.constant 0 : i32
    %c0_i32_1 = arith.constant 0 : i32
    return %c0_i32, %c0_i32_0 : i32, i32
  }
  func.func @transform_10(%arg0: i32) -> (i32, i32, i32) {
    %c0_i32 = arith.constant 0 : i32
    %c0_i32_0 = arith.constant 0 : i32
    %c0_i32_1 = arith.constant 0 : i32
    %c0_i32_2 = arith.constant 0 : i32
    return %c0_i32, %c0_i32_0, %c0_i32_1 : i32, i32, i32
  }
  func.func @transform_11(%arg0: i32) -> (i32, i32) {
    %c0_i32 = arith.constant 0 : i32
    %c0_i32_0 = arith.constant 0 : i32
    %c0_i32_1 = arith.constant 0 : i32
    return %c0_i32, %c0_i32_0 : i32, i32
  }
  func.func @transform_12(%arg0: i32) -> (i32, i32) {
    %c0_i32 = arith.constant 0 : i32
    %c0_i32_0 = arith.constant 0 : i32
    %c0_i32_1 = arith.constant 0 : i32
    return %c0_i32, %c0_i32_0 : i32, i32
  }
  func.func @transform_13(%arg0: i32) -> (i32, i32) {
    %c0_i32 = arith.constant 0 : i32
    %c0_i32_0 = arith.constant 0 : i32
    %c0_i32_1 = arith.constant 0 : i32
    return %c0_i32, %c0_i32_0 : i32, i32
  }
  func.func @transform_14(%arg0: i32) -> (i32, i32) {
    %c0_i32 = arith.constant 0 : i32
    %c0_i32_0 = arith.constant 0 : i32
    %c0_i32_1 = arith.constant 0 : i32
    return %c0_i32, %c0_i32_0 : i32, i32
  }
  func.func @transform_15(%arg0: i32) -> (i32, i32, i32) {
    %c0_i32 = arith.constant 0 : i32
    %c0_i32_0 = arith.constant 0 : i32
    %c0_i32_1 = arith.constant 0 : i32
    return %arg0, %c0_i32, %c0_i32_0 : i32, i32, i32
  }
}

</mosaic_0001>

<bundles_post_ra>
// kernel: _lambda_.1
= control target key start
LH: loop header
LB: loop body
LE: loop exit
PB: predicated region body
PF: predicated region fallthrough
CT: control target
= control target key end

     0   :  { %s2355_s0 = inlined_call_operand.vmem [shape: f32[2,8,16], index: 0, kind: input, shape index: {}]   ;;  %s2356_s1 = inlined_call_operand.vmem [shape: bf16[3,8,8], index: 1, kind: input, shape index: {}]   ;;  %s2357_s2 = inlined_call_operand.vmem [shape: f32[8,1], index: 2, kind: input, shape index: {}]   ;;  %s2358_s3 = inlined_call_operand.vmem [shape: bf16[3,8,8], index: 3, kind: input, shape index: {}]   ;;  %s2359_s4 = inlined_call_operand.vmem [shape: f32[8,1], index: 4, kind: input, shape index: {}]   ;;  %s2360_s5 = inlined_call_operand.vmem [shape: bf16[16,20], index: 5, kind: input, shape index: {}]   ;;  %s2361_s6 = inlined_call_operand.vmem [shape: bf16[8,8], index: 6, kind: input, shape index: {}]   ;;  %s2362_s7 = inlined_call_operand.vmem [shape: f32[8,1], index: 7, kind: input, shape index: {}]   ;;  %s2363_s8 = inlined_call_operand.vmem [shape: bf16[3,16,8], index: 8, kind: input, shape index: {}]   ;;  %s2364_s9 = inlined_call_operand.vmem [shape: f32[16,1], index: 9, kind: input, shape index: {}]   ;;  %s2365_s10 = inlined_call_operand.vmem [shape: bf16[3,16,16], index: 10, kind: input, shape index: {}]   ;;  %s2366_s11 = inlined_call_operand.vmem [shape: f32[16,1], index: 11, kind: input, shape index: {}]   ;;  %s2367_s12 = inlined_call_operand.vmem [shape: bf16[20,128], index: 12, kind: input, shape index: {}]   ;;  %s2368_s13 = inlined_call_operand.vmem [shape: bf16[16,8], index: 13, kind: input, shape index: {}]   ;;  %s2369_s14 = inlined_call_operand.vmem [shape: f32[16,1], index: 14, kind: input, shape index: {}]   ;;  %s2370_s15 = inlined_call_operand.hbm [shape: f32[2,16,128], index: 15, kind: output, shape index: {}]  }
   0x1   :  { %2373 = sst [smem:[#allocation9_spill]] %s2355_s0 }
   0x2   :  { %2374 = sst [smem:[#allocation10_spill]] %s2356_s1 }
   0x3   :  { %2375 = sst [smem:[#allocation11_spill]] %s2357_s2 }
   0x4   :  { %2376 = sst [smem:[#allocation12_spill]] %s2358_s3 }
   0x5   :  { %20 = vsyncpa [#allocation7], 0 }
   0x6   :  { %22 = vsyncpa [#allocation7 + $0x1], 0  ;;  %s2062_s18 = smov 0   ;;  %s2064_s19 = smov 0  }
   0x7   :  { %s2066_s20 = smov 0   ;;  %s2068_s21 = smov 0  }
   0x8 LB: > { %s2083_s22 = sadd.s32 4294967295, %s1969_s21   ;;  %s1635_s23 = sadd.s32 4294967294, %s1969_s21   ;;  %s1969_s21 = sphi %s2068_s21, %s2388_s21   ;;  %s1965_s20 = sphi %s2066_s20, %s2387_s20   ;;  %s1961_s19 = sphi %s2064_s19, %s2386_s19   ;;  %s1957_s18 = sphi %s2062_s18, %s2385_s18  }
   0x9   : > { %s2087_s24 = sadd.s32 1, %s1969_s21   ;;  %s355_s25 = sadd.s32 1, %s1965_s20 }
   0xa   : > { %s352_s26 = ssub.s32 %s1969_s21, %s2087_s24  ;;  %p365_p0 = scmp.ne.s32.totalorder %s1965_s20, %s1961_s19 }
   0xb   : > { %p353_p1 = scmp.eq.s32.totalorder %s352_s26, 0  ;;  %p366_p2 = scmp.eq.s32.totalorder %s2083_s22, 1 }
   0xc   : > { %p371_p3 = scmp.ne.s32.totalorder %s1961_s19, %s1957_s18  ;;  %p372_p4 = scmp.eq.s32.totalorder %s1635_s23, 1 }
   0xd   : > { %s2098_s27 = scalar_select %p353_p1, %s1965_s20, %s355_s25  }
   0xe   : > { %p2100_p5 = por %p366_p2, %p365_p0  ;;  %p2104_p6 = por %p372_p4, %p371_p3 }
   0xf   : > { %p1638_p7 = scmp.ge.s32.totalorder %s1969_s21, 1  ;;  %p439_p8 = scmp.lt.s32.totalorder %s1969_s21, 3 }
  0x11   : > { %p440_p9 = pnand %p1638_p7, %p439_p8 }
  0x12   : > { %p486_p10 = scmp.lt.s32.totalorder (!%p440_p9), %s2083_s22, 1  ;;  %v1971_v0 = vmov (!%p440_p9), 0   ;;  %s2379_s0 = sld [smem:[#allocation9_spill]] (!%p440_p9)  ;;  %vm499_vm0 = vcmask (!%p440_p9), 142352   ;;  %vm501_vm1 = vcmask (!%p440_p9), 11264   ;;  %vm503_vm2 = vcmask (!%p440_p9), 158864  }
  0x13   : > { %443 = sbr.rel (%p440_p9) target bundleno = 2233 (0x8b9), region = 80  ;;  %1874 = vset.pattern.permute.xlu1 (!%p440_p9), %v1971_v0  ;;  %1875 = vset.pattern.permute.xlu0 (!%p440_p9), %v1971_v0  ;;  %s2371_s26 = smov (!%p440_p9), 2   ;;  %v1973_v4 = vmov (!%p440_p9), 0.0   ;;  %vm1974_vm3 = vmmov (!%p440_p9), 0   ;;  %vm518_vm4 = vcmask (!%p440_p9), 1043456   ;;  %vm514_vm5 = vcmask (!%p440_p9), 64512  }
  0x14   : > { %1727 = vmatprep.subr.bf16.mxu0 (!%p440_p9), %v1973_v4  ;;  %1733 = vmatprep.subr.bf16.mxu1 (!%p440_p9), %v1973_v4  ;;  %s2380_s1 = sld [smem:[#allocation10_spill]] (!%p440_p9)  ;;  %s1975_s17 = smov (!%p440_p9), 127   ;;  %vm682_vm6 = vcmask (!%p440_p9), 158736   ;;  %vm685_vm7 = vcmask (!%p440_p9), 175264   ;;  %v856_v48 = vld [vmem:[%s2362_s7] sm:$0xff] (!%p440_p9)  ;;  %vm917_vm8 = vcmask (!%p440_p9), 130048  }
  0x15   : > { %1729 = vmatprep.mubr.msk.bf16.mxu0 (!%p440_p9), %vm1974_vm3, %v1973_v4  ;;  %1735 = vmatprep.mubr.msk.bf16.mxu1 (!%p440_p9), %vm1974_vm3, %v1973_v4  ;;  %s1976_s23 = smov (!%p440_p9), 126   ;;  %s2381_s2 = sld [smem:[#allocation11_spill]] (!%p440_p9)  ;;  %v839_v49 = vld [vmem:[%s2359_s4] sm:$0xff] (!%p440_p9)  ;;  %vm978_vm9 = vcmask (!%p440_p9), 191520   ;;  %vm980_vm10 = vcmask (!%p440_p9), 27648   ;;  %vm982_vm11 = vcmask (!%p440_p9), 224448  }
  0x16   : > { %s2383_s3 = sld [smem:[#allocation12_spill]] (!%p440_p9)  ;;  %v855_v50 = vld [vmem:[%s2361_s6] sm:$0xf] (!%p440_p9)  ;;  %vm1197_vm12 = vcmask (!%p440_p9), 31744   ;;  %vm1195_vm13 = vcmask (!%p440_p9), 228384   ;;  %vm1199_vm14 = vcmask (!%p440_p9), 1047776  }
  0x17   : > { %v1878_v57 = vld [vmem:[%s2360_s5] sm:$0xff] (!%p440_p9)   ;;  %1201 = vst.msk [vmem:[#allocation5 + $0x8] sm:$0xff] (!%p440_p9), %vm1197_vm12, %v1971_v0  ;;  %vm1220_vm15 = vcmask (!%p440_p9), 1031168  }
  0x1a   : > { %s487_s30 = scalar_select %p486_p10, %s2083_s22, 1  ;;  %v505_v8 = vld [vmem:[%s2380_s1] sm:$0xf]  ;;  %v1642_v13 = vld [vmem:[%s2380_s1 + $0x4] sm:$0xf] }
  0x1b   : > { %v659_v9 = vld [vmem:[%s2381_s2] sm:$0xff]  ;;  %v1646_v15 = vld [vmem:[%s2380_s1 + $0x8] sm:$0xf]  ;;  %s1979_s2 = smov [#allocation6]  }
  0x1c   : > { %s1640_s16 = sshll.u32 %s487_s30, 3  ;;  %s2382_s30 = smov 2   ;;  %v687_v46 = vld [vmem:[%s2383_s3] sm:$0xf]  ;;  %v1649_v54 = vld [vmem:[%s2383_s3 + $0x4] sm:$0xf] }
  0x1d   : > { %s489_s25 = scalar_lea.vmem %s2379_s0, %s1640_s16  ;;  %v1653_v56 = vld [vmem:[%s2383_s3 + $0x8] sm:$0xf]  ;;  %s1978_s16 = smov 124  }
  0x1e   : > { %v491_v1 = vld [vmem:[%s489_s25] sm:$0xff]  ;;  %s2372_s25 = smov 4   ;;  %s1911_s3 = sshll.u32 %s1979_s2, 4  ;;  %s1912_s3 = int_to_ptr.vmem [resolvable:$false] %s1911_s3 }
  0x1f   : > { %v2117_v2 = vpack.c.bf16 %v491_v1, %v491_v1 }
  0x21   : > { %496 = vrot.lane.b32.xlu0 %v2117_v2, %s2371_s26  ;;  %v866_v47 = vsel %vm518_vm4, %v2117_v2, 0  ;;  %s2384_s26 = smov 4  }
  0x93   : > { %v497_v3 = vpop.permute.xlu0 %496 }
  0x94   : > { %500 = vst.msk [vmem:[#allocation2] sm:$0xf] %vm499_vm0, %v497_v3  ;;  %vm1328_vm0 = vcmask 1014784  }
  0x95   : > { %502 = vst.msk [vmem:[#allocation2] sm:$0xf] %vm501_vm1, %v1971_v0 }
  0x96   : > { %504 = vst.msk [vmem:[#allocation2] sm:$0xf] %vm503_vm2, %v1971_v0  ;;  %vm1488_vm2 = vcmask 162816  }
  0x9d   : > { %v506_v5 = vld [vmem:[#allocation2] sm:$0xf] }
  0x9e   : > { %v1643_v6 = vcombine.low %v506_v5, %v506_v5  ;;  %v566_v7 = vsel %vm518_vm4, %v506_v5, 0 }
  0x9f   : > { %1734 = vmatpush3.bf16.msra.mxu1 %v566_v7 }
  0xa0   : > { %512 = vrot.lane.b32.xlu0 %v1643_v6, %s1975_s17  ;;  %610 = vrot.lane.b32.xlu1 %v1643_v6, %s1976_s23 }
  0xa1   : > { %1745 = vmatprep.subr.bf16.mxu1 %v1973_v4 }
  0xa2   : > { %1736 = vmatmul.mubr.msk.bf16.vlgmr.msra.gmra.mrb[0].mxu1 %vm514_vm5, %v505_v8 }
  0xa3   : > { %1747 = vmatprep.mubr.msk.bf16.mxu1 %vm1974_vm3, %v1973_v4 }
  0xa4   : > { %662 = vperm.xlu1 %1874, %v659_v9  }
 0x112   : > { %v513_v10 = vpop.permute.xlu0 %512  ;;  %v611_v11 = vpop.permute.xlu1 %610 }
 0x113   : > { %v520_v12 = vsel %vm518_vm4, %v513_v10, 0  ;;  %v616_v14 = vsel %vm518_vm4, %v611_v11, 0 }
 0x114   : > { %1728 = vmatpush3.bf16.msra.mxu0 %v520_v12 }
 0x115   : > { %1739 = vmatprep.subr.bf16.mxu0 %v1973_v4 }
 0x117   : > { %1730 = vmatmul.mubr.msk.bf16.vlgmr.msra.gmra.mrb[0].mxu0 %vm514_vm5, %v1642_v13 }
 0x118   : > { %1740 = vmatpush3.bf16.msra.mxu0 %v616_v14  ;;  %1741 = vmatprep.mubr.msk.bf16.mxu0 %vm1974_vm3, %v1973_v4 }
 0x119   : > { %1751 = vmatprep.subr.bf16.mxu0 %v1973_v4 }
 0x11f   : > { %1742 = vmatmul.mubr.msk.bf16.vlgmr.msra.gmra.mrb[4].mxu0 %vm514_vm5, %v1646_v15 }
 0x120   : > { %1753 = vmatprep.mubr.msk.bf16.mxu0 %vm1974_vm3, %v1973_v4 }
 0x123   : > { %v663_v26 = vpop.permute.xlu1 %662 }
 0x175   : > { %v602_v16 = vpop.f32.mrb[0].mxu1 }
 0x176   : > { %v1737_v17 = vpop.f32.mrb[1].mxu1 }
 0x177   : > { %v605_v18 = vpop.f32.mrb[2].mxu1 }
 0x178   : > { %v1738_v19 = vpop.f32.mrb[3].mxu1 }
 0x1ea   : > { %v556_v20 = vpop.f32.mrb[0].mxu0 }
 0x1eb   : > { %v603_v21 = vadd.f32 %v602_v16, %v556_v20  ;;  %v1731_v22 = vpop.f32.mrb[1].mxu0 }
 0x1ec   : > { %v559_v23 = vpop.f32.mrb[2].mxu0 }
 0x1ed   : > { %v1732_v24 = vpop.f32.mrb[3].mxu0 }
 0x1f2   : > { %v652_v25 = vpop.f32.mrb[4].mxu0 }
 0x1f3   : > { %v658_v27 = vadd.f32 %v652_v25, %v603_v21  ;;  %v1743_v28 = vpop.f32.mrb[5].mxu0 }
 0x1f4   : > { %v655_v29 = vpop.f32.mrb[6].mxu0 }
 0x1f5   : > { %v665_v30 = vadd.f32 %v663_v26, %v658_v27  ;;  %v1744_v31 = vpop.f32.mrb[7].mxu0 }
 0x1f7   : > { %v667_v32 = vmul.f32 0.044715, %v665_v30  ;;  %v666_v38 = vmul.f32 0.5, %v665_v30 }
 0x1f9   : > { %v668_v33 = vmul.f32 %v667_v32, %v665_v30 }
 0x1fb   : > { %v669_v34 = vmul.f32 %v668_v33, %v665_v30 }
 0x1fd   : > { %v670_v35 = vadd.f32 %v669_v34, %v665_v30 }
 0x1ff   : > { %v671_v36 = vmul.f32 0.7978846, %v670_v35 }
 0x201   : > { %1889 = vtanh.f32 %v671_v36 }
 0x20b   : > { %v1890_v37 = vpop.eup %1889 }
 0x20c   : > { %v673_v39 = vadd.f32 1.0, %v1890_v37 }
 0x20e   : > { %v674_v40 = vmul.f32 %v673_v39, %v666_v38 }
 0x210   : > { %v1691_v41 = vpack.c.bf16 %v674_v40, %v674_v40 }
 0x212   : > { %679 = vrot.lane.b32.xlu0 %v1691_v41, %s2382_s30 }
 0x284   : > { %v680_v42 = vpop.permute.xlu0 %679 }
 0x285   : > { %683 = vst.msk [vmem:[#allocation3] sm:$0xf] %vm682_vm6, %v680_v42 }
 0x286   : > { %684 = vst.msk [vmem:[#allocation3] sm:$0xf] %vm501_vm1, %v1971_v0  ;;  %vm1492_vm1 = vcmask 1041408  }
 0x287   : > { %686 = vst.msk [vmem:[#allocation3] sm:$0xf] %vm685_vm7, %v1971_v0 }
 0x28e   : > { %v688_v43 = vld [vmem:[#allocation3] sm:$0xf] }
 0x28f   : > { %v746_v44 = vsel %vm518_vm4, %v688_v43, 0  ;;  %v1650_v45 = vcombine.low %v688_v43, %v688_v43 }
 0x290   : > { %1752 = vmatpush3.bf16.msra.mxu0 %v746_v44 }
 0x291   : > { %694 = vrot.lane.b32.xlu1 %v1650_v45, %s1975_s17  ;;  %1763 = vmatprep.subr.bf16.mxu0 %v1973_v4  ;;  %s1693_s17 = sshll.u32 %s2083_s22, 8 }
 0x292   : > { %790 = vrot.lane.b32.xlu0 %v1650_v45, %s1976_s23 }
 0x293   : > { %1754 = vmatmul.mubr.msk.bf16.vlgmr.msra.gmra.mrb[8].mxu0 %vm514_vm5, %v687_v46 }
 0x294   : > { %1764 = vmatpush3.bf16.msra.mxu0 %v866_v47  ;;  %1765 = vmatprep.mubr.msk.bf16.mxu0 %vm1974_vm3, %v1973_v4  ;;  %v1881_v47 = vld [vmem:[%s2363_s8] sm:$0xff]  }
 0x295   : > { %859 = vperm.xlu1 %1874, %v856_v48   ;;  %1775 = vmatprep.subr.bf16.mxu0 %v1973_v4  ;;  %v1159_v48 = vld [vmem:[%s2364_s9 + $0x8] sm:$0xff] }
 0x296   : > { %842 = vperm.xlu0 %1875, %v839_v49   ;;  %v1158_v49 = vld [vmem:[%s2364_s9] sm:$0xff] }
 0x29b   : > { %1766 = vmatmul.mubr.msk.bf16.vlgmr.msra.gmra.mrb[12].mxu0 %vm514_vm5, %v855_v50 }
 0x29c   : > { %1777 = vmatprep.mubr.msk.bf16.mxu0 %vm1974_vm3, %v1973_v4 }
 0x303   : > { %v695_v51 = vpop.permute.xlu1 %694 }
 0x304   : > { %v700_v52 = vsel %vm518_vm4, %v695_v51, 0  ;;  %v791_v53 = vpop.permute.xlu0 %790 }
 0x305   : > { %1746 = vmatpush3.bf16.msra.mxu1 %v700_v52  ;;  %v796_v55 = vsel %vm518_vm4, %v791_v53, 0  ;;  %v1880_v53 = vld [vmem:[%s2363_s8 + $0x8] sm:$0xff]  }
 0x306   : > { %1757 = vmatprep.subr.bf16.mxu1 %v1973_v4 }
 0x308   : > { %1748 = vmatmul.mubr.msk.bf16.vlgmr.msra.gmra.mrb[4].mxu1 %vm514_vm5, %v1649_v54 }
 0x309   : > { %1758 = vmatpush3.bf16.msra.mxu1 %v796_v55  ;;  %1759 = vmatprep.mubr.msk.bf16.mxu1 %vm1974_vm3, %v1973_v4  ;;  %v1882_v55 = vld [vmem:[%s2363_s8 + $0x10] sm:$0xff]  }
 0x30a   : > { %1769 = vmatprep.subr.bf16.mxu1 %v1973_v4 }
 0x310   : > { %1760 = vmatmul.mubr.msk.bf16.vlgmr.msra.gmra.mrb[8].mxu1 %vm514_vm5, %v1653_v56 }
 0x311   : > { %1770 = vmatpush3.bf16.msra.mxu1 %v1878_v57  ;;  %1771 = vmatprep.mubr.msk.bf16.mxu1 %vm1974_vm3, %v1973_v4 }
 0x312   : > { %1781 = vmatprep.subr.bf16.mxu1 %v1973_v4 }
 0x314   : > { %v860_v62 = vpop.permute.xlu1 %859 }
 0x315   : > { %v843_v17 = vpop.permute.xlu0 %842 }
 0x366   : > { %v782_v58 = vpop.f32.mrb[8].mxu0 }
 0x367   : > { %v1755_v59 = vpop.f32.mrb[9].mxu0 }
 0x368   : > { %v785_v60 = vpop.f32.mrb[10].mxu0 }
 0x369   : > { %v1756_v61 = vpop.f32.mrb[11].mxu0 }
 0x36e   : > { %v902_v63 = vpop.f32.mrb[12].mxu0 }
 0x36f   : > { %v903_v1 = vadd.f32 %v902_v63, %v860_v62  ;;  %v1767_v2 = vpop.f32.mrb[13].mxu0 }
 0x370   : > { %v905_v3 = vpop.f32.mrb[14].mxu0 }
 0x371   : > { %v908_v5 = vpack.c.bf16 %v903_v1, %v903_v1  ;;  %v1768_v6 = vpop.f32.mrb[15].mxu0 }
 0x373   : > { %1772 = vmatmul.mubr.msk.bf16.vlgmr.msra.gmra.mrb[12].mxu1 %vm917_vm8, %v908_v5 }
 0x374   : > { %1783 = vmatprep.mubr.msk.bf16.mxu1 %vm1974_vm3, %v1973_v4 }
 0x3db   : > { %v736_v7 = vpop.f32.mrb[4].mxu1 }
 0x3dc   : > { %v783_v8 = vadd.f32 %v782_v58, %v736_v7  ;;  %v1749_v9 = vpop.f32.mrb[5].mxu1 }
 0x3dd   : > { %v739_v10 = vpop.f32.mrb[6].mxu1 }
 0x3de   : > { %v1750_v11 = vpop.f32.mrb[7].mxu1 }
 0x3e3   : > { %v832_v12 = vpop.f32.mrb[8].mxu1 }
 0x3e4   : > { %v838_v13 = vadd.f32 %v832_v12, %v783_v8  ;;  %v1761_v14 = vpop.f32.mrb[9].mxu1 }
 0x3e5   : > { %v835_v15 = vpop.f32.mrb[10].mxu1 }
 0x3e6   : > { %v1762_v16 = vpop.f32.mrb[11].mxu1  ;;  %v845_v18 = vadd.f32 %v843_v17, %v838_v13 }
 0x3e8   : > { %v847_v19 = vmul.f32 0.044715, %v845_v18  ;;  %v846_v26 = vmul.f32 0.5, %v845_v18 }
 0x3ea   : > { %v848_v20 = vmul.f32 %v847_v19, %v845_v18 }
 0x3ec   : > { %v849_v21 = vmul.f32 %v848_v20, %v845_v18 }
 0x3ee   : > { %v850_v22 = vadd.f32 %v849_v21, %v845_v18 }
 0x3f0   : > { %v851_v23 = vmul.f32 0.7978846, %v850_v22 }
 0x3f2   : > { %1891 = vtanh.f32 %v851_v23 }
 0x3fc   : > { %v1892_v24 = vpop.eup %1891 }
 0x3fd   : > { %v853_v25 = vadd.f32 1.0, %v1892_v24 }
 0x3ff   : > { %v854_v27 = vmul.f32 %v853_v25, %v846_v26 }
 0x446   : > { %v955_v28 = vpop.f32.mrb[12].mxu1 }
 0x447   : > { %v961_v29 = vadd.f32 %v955_v28, %v854_v27  ;;  %v1773_v30 = vpop.f32.mrb[13].mxu1 }
 0x448   : > { %v958_v31 = vpop.f32.mrb[14].mxu1 }
 0x449   : > { %v963_v32 = vmul.f32 0.044715, %v961_v29  ;;  %v1774_v33 = vpop.f32.mrb[15].mxu1  ;;  %v962_v39 = vmul.f32 0.5, %v961_v29 }
 0x44a   : > { %v1208_v33 = vld [vmem:[#allocation5 + $0x8] sm:$0xff] }
 0x44b   : > { %v964_v34 = vmul.f32 %v963_v32, %v961_v29 }
 0x44d   : > { %v965_v35 = vmul.f32 %v964_v34, %v961_v29  ;;  %v1412_v34 = vld [vmem:[%s2369_s14 + $0x8] sm:$0xff] }
 0x44f   : > { %v966_v36 = vadd.f32 %v965_v35, %v961_v29  ;;  %v1378_v35 = vld [vmem:[%s2366_s11 + $0x8] sm:$0xff] }
 0x451   : > { %v967_v37 = vmul.f32 0.7978846, %v966_v36 }
 0x453   : > { %1893 = vtanh.f32 %v967_v37 }
 0x45d   : > { %v1894_v38 = vpop.eup %1893 }
 0x45e   : > { %v969_v40 = vadd.f32 1.0, %v1894_v38  ;;  %v1883_v38 = vld [vmem:[%s2365_s10] sm:$0xff]  }
 0x460   : > { %v970_v41 = vmul.f32 %v969_v40, %v962_v39  ;;  %v1884_v40 = vld [vmem:[%s2368_s13] sm:$0xff]  }
 0x462   : > { %v2211_v42 = vpack.c.bf16 %v970_v41, %v970_v41  ;;  %v1377_v41 = vld [vmem:[%s2366_s11] sm:$0xff] }
 0x464   : > { %975 = vrot.lane.b32.xlu1 %v2211_v42, %s2372_s25  ;;  %v1432_v39 = vsel %vm518_vm4, %v2211_v42, 0  ;;  %s2310_s25 = scalar_lea.hbm %s2370_s15, %s1693_s17  ;;  %s1913_s17 = scalar_lea.vmem %s1912_s3, 512 }
 0x4d6   : > { %v976_v43 = vpop.permute.xlu1 %975 }
 0x4d7   : > { %979 = vst.msk [vmem:[#allocation4] sm:$0xf] %vm978_vm9, %v976_v43 }
 0x4d8   : > { %981 = vst.msk [vmem:[#allocation4] sm:$0xf] %vm980_vm10, %v1971_v0 }
 0x4d9   : > { %983 = vst.msk [vmem:[#allocation4] sm:$0xf] %vm982_vm11, %v1971_v0 }
 0x4e0   : > { %v986_v44 = vld [vmem:[#allocation4] sm:$0xf] }
 0x4e1   : > { %v1662_v45 = vcombine.low %v986_v44, %v986_v44  ;;  %v1056_v46 = vsel %vm518_vm4, %v986_v44, 0 }
 0x4e2   : > { %1782 = vmatpush3.bf16.msra.mxu1 %v1056_v46 }
 0x4e3   : > { %1107 = vrot.lane.b32.xlu0 %v1662_v45, %s1978_s16  ;;  %998 = vrot.lane.b32.xlu1 %v1662_v45, %s1976_s23  ;;  %v1885_v45 = vld [vmem:[%s2365_s10 + $0x8] sm:$0xff]  }
 0x4e4   : > { %1793 = vmatprep.subr.bf16.mxu1 %v1973_v4 }
 0x4e5   : > { %1784 = vmatmul.mubr.msk.bf16.vlgmr.msra.gmra.mrb[16].mxu1 %vm514_vm5, %v1881_v47 }
 0x4e6   : > { %1795 = vmatprep.mubr.msk.bf16.mxu1 %vm1974_vm3, %v1973_v4 }
 0x4e7   : > { %1167 = vperm.xlu0 %1875, %v1159_v48   ;;  %1162 = vperm.xlu1 %1874, %v1158_v49   ;;  %v1886_v49 = vld [vmem:[%s2365_s10 + $0x10] sm:$0xff]  }
 0x555   : > { %v999_v50 = vpop.permute.xlu1 %998  ;;  %v1108_v51 = vpop.permute.xlu0 %1107 }
 0x556   : > { %v1004_v52 = vsel %vm518_vm4, %v999_v50, 0  ;;  %v1113_v54 = vsel %vm518_vm4, %v1108_v51, 0  ;;  %v1887_v50 = vld [vmem:[%s2367_s12] sm:$0xff]   ;;  %v1888_v51 = vld [vmem:[%s2367_s12 + $0x8] ss:$0 sps:$4 sm:$0x33]  }
 0x557   : > { %1776 = vmatpush3.bf16.msra.mxu0 %v1004_v52  ;;  %v1494_v52 = vsel %vm1492_vm1, %v1888_v51, 0 }
 0x558   : > { %1787 = vmatprep.subr.bf16.mxu0 %v1973_v4 }
 0x55a   : > { %1778 = vmatmul.mubr.msk.bf16.vlgmr.msra.gmra.mrb[16].mxu0 %vm514_vm5, %v1880_v53 }
 0x55b   : > { %1788 = vmatpush3.bf16.msra.mxu0 %v1113_v54  ;;  %1789 = vmatprep.mubr.msk.bf16.mxu0 %vm1974_vm3, %v1973_v4 }
 0x55c   : > { %1799 = vmatprep.subr.bf16.mxu0 %v1973_v4 }
 0x562   : > { %1790 = vmatmul.mubr.msk.bf16.vlgmr.msra.gmra.mrb[20].mxu0 %vm514_vm5, %v1882_v55 }
 0x563   : > { %1801 = vmatprep.mubr.msk.bf16.mxu0 %vm1974_vm3, %v1973_v4 }
 0x566   : > { %v1163_v7 = vpop.permute.xlu1 %1162  ;;  %v1168_v12 = vpop.permute.xlu0 %1167 }
 0x5b8   : > { %v1092_v56 = vpop.f32.mrb[16].mxu1 }
 0x5b9   : > { %v1785_v57 = vpop.f32.mrb[17].mxu1 }
 0x5ba   : > { %v1095_v58 = vpop.f32.mrb[18].mxu1 }
 0x5bb   : > { %v1786_v59 = vpop.f32.mrb[19].mxu1 }
 0x62d   : > { %v1040_v60 = vpop.f32.mrb[16].mxu0 }
 0x62e   : > { %v1093_v61 = vadd.f32 %v1092_v56, %v1040_v60  ;;  %v1779_v62 = vpop.f32.mrb[17].mxu0 }
 0x62f   : > { %v1043_v63 = vpop.f32.mrb[18].mxu0 }
 0x630   : > { %v1096_v1 = vadd.f32 %v1095_v58, %v1043_v63  ;;  %v1780_v2 = vpop.f32.mrb[19].mxu0 }
 0x635   : > { %v1149_v3 = vpop.f32.mrb[20].mxu0 }
 0x636   : > { %v1156_v5 = vadd.f32 %v1149_v3, %v1093_v61  ;;  %v1791_v6 = vpop.f32.mrb[21].mxu0 }
 0x637   : > { %v1152_v8 = vpop.f32.mrb[22].mxu0 }
 0x638   : > { %v1170_v9 = vadd.f32 %v1163_v7, %v1156_v5  ;;  %v1157_v10 = vadd.f32 %v1152_v8, %v1096_v1  ;;  %v1792_v11 = vpop.f32.mrb[23].mxu0 }
 0x63a   : > { %v1174_v13 = vmul.f32 0.044715, %v1170_v9  ;;  %v1171_v14 = vadd.f32 %v1168_v12, %v1157_v10  ;;  %v1172_v27 = vmul.f32 0.5, %v1170_v9 }
 0x63c   : > { %v1176_v15 = vmul.f32 %v1174_v13, %v1170_v9  ;;  %v1175_v16 = vmul.f32 0.044715, %v1171_v14  ;;  %v1173_v28 = vmul.f32 0.5, %v1171_v14 }
 0x63e   : > { %v1177_v17 = vmul.f32 %v1175_v16, %v1171_v14  ;;  %v1178_v18 = vmul.f32 %v1176_v15, %v1170_v9 }
 0x640   : > { %v1179_v19 = vmul.f32 %v1177_v17, %v1171_v14  ;;  %v1180_v20 = vadd.f32 %v1178_v18, %v1170_v9 }
 0x642   : > { %v1181_v21 = vadd.f32 %v1179_v19, %v1171_v14  ;;  %v1182_v22 = vmul.f32 0.7978846, %v1180_v20 }
 0x644   : > { %v1183_v23 = vmul.f32 0.7978846, %v1181_v21  ;;  %1895 = vtanh.f32 %v1182_v22 }
 0x646   : > { %1897 = vtanh.f32 %v1183_v23 }
 0x64e   : > { %v1896_v24 = vpop.eup %1895 }
 0x64f   : > { %v1186_v25 = vadd.f32 1.0, %v1896_v24 }
 0x650   : > { %v1898_v26 = vpop.eup %1897 }
 0x651   : > { %v1187_v29 = vadd.f32 1.0, %v1898_v26  ;;  %v1188_v30 = vmul.f32 %v1186_v25, %v1172_v27 }
 0x653   : > { %v1189_v31 = vmul.f32 %v1187_v29, %v1173_v28 }
 0x655   : > { %v1190_v32 = vpack.c.bf16 %v1189_v31, %v1188_v30 }
 0x657   : > { %1192 = vrot.lane.b32.xlu1 %v1190_v32, %s2384_s26 }
 0x65b   : > { %1218 = vrot.lane.b32.xlu1 %v1208_v33, %s1976_s23 }
 0x65f   : > { %1326 = vrot.lane.b32.xlu1 %v1208_v33, %s1978_s16 }
 0x663   : > { %1420 = vperm.xlu1 %1874, %v1412_v34  }
 0x667   : > { %1386 = vperm.xlu1 %1874, %v1378_v35  }
 0x6c9   : > { %v1193_v36 = vpop.permute.xlu1 %1192 }
 0x6ca   : > { %1196 = vst.msk [vmem:[#allocation5] sm:$0xff] %vm1195_vm13, %v1193_v36 }
 0x6cb   : > { %1198 = vst.msk [vmem:[#allocation5] sm:$0xff] %vm1197_vm12, %v1971_v0 }
 0x6cc   : > { %1200 = vst.msk [vmem:[#allocation5] sm:$0xff] %vm1199_vm14, %v1971_v0  ;;  %v1411_v0 = vld [vmem:[%s2369_s14] sm:$0xff] }
 0x6cd   : > { %v1219_v42 = vpop.permute.xlu1 %1218 }
 0x6d1   : > { %v1327_v46 = vpop.permute.xlu1 %1326 }
 0x6d3   : > { %v1204_v37 = vld [vmem:[#allocation5] sm:$0xff] }
 0x6d4   : > { %1216 = vrot.lane.b32.xlu0 %v1204_v37, %s1976_s23  ;;  %1800 = vmatpush3.bf16.msra.mxu0 %v1204_v37 }
 0x6d5   : > { %1811 = vmatprep.subr.bf16.mxu0 %v1973_v4 }
 0x6d7   : > { %1802 = vmatmul.mubr.msk.bf16.vlgmr.msra.gmra.mrb[24].mxu0 %vm917_vm8, %v1883_v38 }
 0x6d8   : > { %1324 = vrot.lane.b32.xlu0 %v1204_v37, %s1978_s16  ;;  %1812 = vmatpush3.bf16.msra.mxu0 %v1432_v39  ;;  %s483_s16 = sand.u32 1, %s1961_s19  }
 0x6d9   : > { %1813 = vmatprep.mubr.msk.bf16.mxu0 %vm1974_vm3, %v1973_v4  ;;  %s1639_s26 = sshll.u32 %s483_s16, 4  ;;  %s2314_s22 = scalar_lea.sflag [#allocation7], %s483_s16 }
 0x6da   : > { %s485_s30 = scalar_lea.vmem [#allocation6], %s1639_s26 }
 0x6db   : > { %s1573_s0 = sshll.u32 %s485_s30, 4  ;;  %s2312_s0 = int_to_ptr.vmem [resolvable:$true] %s1573_s0 }
 0x6dc   : > { %1415 = vperm.xlu0 %1875, %v1411_v0   ;;  %s1907_s26 = scalar_lea.vmem %s2312_s0, 256  ;;  %p1914_p0 = scmp.lt.s32.totalorder %s2312_s0, %s1912_s3 }
 0x6dd   : > { %p1908_p11 = scmp.ne.s32.totalorder %s2312_s0, %s1907_s26  ;;  %p1915_p1 = scmp.lt.s32.totalorder %s1913_s17, %s1907_s26 }
 0x6df   : > { %1814 = vmatmul.mubr.msk.bf16.vlgmr.msra.gmra.mrb[28].mxu0 %vm514_vm5, %v1884_v40  ;;  %p1909_p12 = pnand %p1908_p11, %p2100_p5  ;;  %p1916_p2 = por %p1915_p1, %p1914_p0 }
 0x6e0   : > { %1381 = vperm.xlu0 %1875, %v1377_v41  }
 0x6e1   : > { %p1910_p13 = pneg %p1909_p12 }
 0x6e2   : > { %v1421_v58 = vpop.permute.xlu1 %1420 }
 0x6e3   : > { %p1917_p3 = pnand %p1916_p2, %p1910_p13 }
 0x6e6   : > { %v1387_v17 = vpop.permute.xlu1 %1386 }
 0x746   : > { %v1217_v43 = vpop.permute.xlu0 %1216 }
 0x747   : > { %v1221_v44 = vsel %vm1220_vm15, %v1217_v43, %v1219_v42 }
 0x748   : > { %1794 = vmatpush3.bf16.msra.mxu1 %v1221_v44 }
 0x749   : > { %1805 = vmatprep.subr.bf16.mxu1 %v1973_v4 }
 0x74a   : > { %v1325_v47 = vpop.permute.xlu0 %1324 }
 0x74b   : > { %1796 = vmatmul.mubr.msk.bf16.vlgmr.msra.gmra.mrb[20].mxu1 %vm917_vm8, %v1885_v45  ;;  %v1329_v48 = vsel %vm1328_vm0, %v1325_v47, %v1327_v46 }
 0x74c   : > { %1806 = vmatpush3.bf16.msra.mxu1 %v1329_v48  ;;  %1807 = vmatprep.mubr.msk.bf16.mxu1 %vm1974_vm3, %v1973_v4 }
 0x74d   : > { %1817 = vmatprep.subr.bf16.mxu1 %v1973_v4 }
 0x753   : > { %1808 = vmatmul.mubr.msk.bf16.vlgmr.msra.gmra.mrb[24].mxu1 %vm917_vm8, %v1886_v49 }
 0x754   : > { %1818 = vmatpush3.bf16.msra.mxu1 %v1887_v50  ;;  %1821 = vmatprep.mubr.msk.bf16.mxu1 %vm1974_vm3, %v1973_v4 }
 0x755   : > { %1819 = vmatprep.subr.bf16.mxu1 %v1973_v4 }
 0x758   : > { %1820 = vmatpush3.bf16.msra.mxu1 %v1494_v52 }
 0x75b   : > { %v1416_v60 = vpop.permute.xlu0 %1415 }
 0x75f   : > { %v1382_v15 = vpop.permute.xlu0 %1381 }
 0x7aa   : > { %v1309_v53 = vpop.f32.mrb[24].mxu0 }
 0x7ab   : > { %v1803_v54 = vpop.f32.mrb[25].mxu0 }
 0x7ac   : > { %v1312_v55 = vpop.f32.mrb[26].mxu0 }
 0x7ad   : > { %v1804_v56 = vpop.f32.mrb[27].mxu0 }
 0x7b2   : > { %v1468_v57 = vpop.f32.mrb[28].mxu0 }
 0x7b3   : > { %v1815_v59 = vpop.f32.mrb[29].mxu0  ;;  %v1469_v62 = vadd.f32 %v1468_v57, %v1416_v60 }
 0x7b4   : > { %v1471_v61 = vpop.f32.mrb[30].mxu0 }
 0x7b5   : > { %v1472_v63 = vadd.f32 %v1471_v61, %v1421_v58  ;;  %v1816_v1 = vpop.f32.mrb[31].mxu0 }
 0x7b7   : > { %v1475_v2 = vpack.c.bf16 %v1472_v63, %v1469_v62 }
 0x7b9   : > { %1822 = vmatmul.mubr.msk.bf16.vlgmr.msra.gmra.mrb[28].mxu1 %vm1488_vm2, %v1475_v2 }
 0x81e   : > { %v1260_v3 = vpop.f32.mrb[20].mxu1 }
 0x81f   : > { %v1310_v5 = vadd.f32 %v1309_v53, %v1260_v3  ;;  %v1797_v4 = vpop.f32.mrb[21].mxu1 }
 0x820   : > { %v1263_v6 = vpop.f32.mrb[22].mxu1 }
 0x821   : > { %v1313_v7 = vadd.f32 %v1312_v55, %v1263_v6  ;;  %v1798_v8 = vpop.f32.mrb[23].mxu1 }
 0x826   : > { %v1368_v9 = vpop.f32.mrb[24].mxu1 }
 0x827   : > { %v1375_v10 = vadd.f32 %v1368_v9, %v1310_v5  ;;  %v1809_v11 = vpop.f32.mrb[25].mxu1 }
 0x828   : > { %v1371_v12 = vpop.f32.mrb[26].mxu1 }
 0x829   : > { %v1376_v13 = vadd.f32 %v1371_v12, %v1313_v7  ;;  %v1810_v14 = vpop.f32.mrb[27].mxu1  ;;  %v1389_v16 = vadd.f32 %v1382_v15, %v1375_v10 }
 0x82b   : > { %v1390_v18 = vadd.f32 %v1387_v17, %v1376_v13  ;;  %v1393_v19 = vmul.f32 0.044715, %v1389_v16  ;;  %v1391_v32 = vmul.f32 0.5, %v1389_v16 }
 0x82d   : > { %v1394_v20 = vmul.f32 0.044715, %v1390_v18  ;;  %v1395_v21 = vmul.f32 %v1393_v19, %v1389_v16  ;;  %v1392_v35 = vmul.f32 0.5, %v1390_v18 }
 0x82f   : > { %v1396_v22 = vmul.f32 %v1394_v20, %v1390_v18  ;;  %v1397_v23 = vmul.f32 %v1395_v21, %v1389_v16 }
 0x831   : > { %v1398_v24 = vmul.f32 %v1396_v22, %v1390_v18  ;;  %v1399_v25 = vadd.f32 %v1397_v23, %v1389_v16 }
 0x833   : > { %v1400_v26 = vadd.f32 %v1398_v24, %v1390_v18  ;;  %v1401_v27 = vmul.f32 0.7978846, %v1399_v25 }
 0x835   : > { %v1402_v28 = vmul.f32 0.7978846, %v1400_v26  ;;  %1899 = vtanh.f32 %v1401_v27 }
 0x837   : > { %1901 = vtanh.f32 %v1402_v28 }
 0x83f   : > { %v1900_v29 = vpop.eup %1899 }
 0x840   : > { %v1405_v31 = vadd.f32 1.0, %v1900_v29 }
 0x841   : > { %v1902_v30 = vpop.eup %1901 }
 0x842   : > { %v1406_v33 = vadd.f32 1.0, %v1902_v30  ;;  %v1407_v34 = vmul.f32 %v1405_v31, %v1391_v32 }
 0x844   : > { %v1408_v39 = vmul.f32 %v1406_v33, %v1392_v35 }
 0x88c   : > { %v1530_v36 = vpop.f32.mrb[28].mxu1 }
 0x88d   : > { %v1537_v37 = vadd.f32 %v1530_v36, %v1407_v34  ;;  %v1823_v38 = vpop.f32.mrb[29].mxu1 }
 0x88e   : > { %v1533_v0 = vpop.f32.mrb[30].mxu1 }
 0x88f   : > { %v1541_v40 = vmul.f32 0.044715, %v1537_v37  ;;  %v1538_v41 = vadd.f32 %v1533_v0, %v1408_v39  ;;  %v1824_v42 = vpop.f32.mrb[31].mxu1  ;;  %v1539_v53 = vmul.f32 0.5, %v1537_v37 }
 0x891   : > { %v1543_v43 = vmul.f32 %v1541_v40, %v1537_v37  ;;  %v1542_v44 = vmul.f32 0.044715, %v1538_v41  ;;  %v1540_v56 = vmul.f32 0.5, %v1538_v41 }
 0x893   : > { %v1545_v45 = vmul.f32 %v1543_v43, %v1537_v37  ;;  %v1544_v46 = vmul.f32 %v1542_v44, %v1538_v41 }
 0x895   : > { %v1547_v47 = vadd.f32 %v1545_v45, %v1537_v37  ;;  %v1546_v48 = vmul.f32 %v1544_v46, %v1538_v41 }
 0x897   : > { %v1549_v49 = vmul.f32 0.7978846, %v1547_v47  ;;  %v1548_v50 = vadd.f32 %v1546_v48, %v1538_v41 }
 0x899   : > { %1903 = vtanh.f32 %v1549_v49  ;;  %v1550_v51 = vmul.f32 0.7978846, %v1548_v50 }
 0x89b   : > { %1905 = vtanh.f32 %v1550_v51 }
 0x8a3   : > { %v1904_v52 = vpop.eup %1903 }
 0x8a4   : > { %v1553_v54 = vadd.f32 1.0, %v1904_v52 }
 0x8a5   : > { %v1906_v55 = vpop.eup %1905 }
 0x8a6   : > { %v1554_v57 = vadd.f32 1.0, %v1906_v55  ;;  %v1555_v58 = vmul.f32 %v1553_v54, %v1539_v53 }
 0x8a8   : > { %v1556_v59 = vmul.f32 %v1554_v57, %v1540_v56  ;;  %1557 = vst [vmem:[%s485_s30] sm:$0xff] %v1555_v58 }
 0x8aa   : > { %1558 = vst [vmem:[%s485_s30 + $0x8] sm:$0xff] %v1556_v59 }
 0x8ab   : > { %1920 = shalt.err (!%p1917_p3)
}
 0x8ac   : > { %s1921_s16 = scalar_lea.hbm %s2310_s25, 256  ;;  %s1925_s2 = scalar_lea.hbm %s2370_s15, 512 }
 0x8ad   : > { %p1922_p4 = scmp.ne.s32.totalorder %s2310_s25, %s1921_s16  ;;  %p1926_p9 = scmp.lt.u32.totalorder %s2310_s25, %s2370_s15 }
 0x8ae   : > { %p1927_p10 = scmp.lt.u32.totalorder %s1925_s2, %s1921_s16  ;;  %p1929_p12 = scmp.lt.u32.totalorder %s1921_s16, %s2310_s25 }
 0x8af   : > { %p1923_p7 = pnand %p1922_p4, %p2100_p5 }
 0x8b0   : > { %p1928_p11 = por %p1927_p10, %p1926_p9 }
 0x8b1   : > { %p1924_p8 = pneg %p1923_p7 }
 0x8b2   : > { %p1930_p13 = por %p1929_p12, %p1928_p11 }
 0x8b4   : > { %p1931_p0 = pnand %p1930_p13, %p1924_p8 }
 0x8b6   : > { %1934 = shalt.err (!%p1931_p0)
}
 0x8b7   : > { %s1980_s26 = smov 128   ;;  %s1981_s17 = smov 8  }
 0x8b8   : > { %1825 = dma.vmem_to_hbm [thread:$0]  (%p2100_p5), %s2312_s0, 256, %s2310_s25, %s2314_s22, %s1980_s26, %s1980_s26, %s1981_s17  }
 0x8b9 PF: > { %p1831_p1 = scmp.ge.s32.totalorder %s1969_s21, 2  ;;  %s1588_s30 = sand.u32 1, %s1957_s18  }
 0x8ba   : > { %s1589_s16 = scalar_lea.sflag [#allocation7], %s1588_s30 }
 0x8bb   : > { %p1828_p2 = pnand %p1831_p1, %p2104_p6 }
 0x8bd   : > { %1952 = dma.done.wait (!%p1828_p2), %s1589_s16, 256  }
 0x8be   : > { %1954 = vsyncadd (!%p1828_p2), %s1589_s16, 4294967040  ;;  %p25_p3 = scmp.ge.s32.totalorder %s2087_s24, 4   ;;  %s2385_s18 = smov %s1961_s19 }
 0x8bf   : > { %s2386_s19 = smov %s1965_s20  ;;  %s2387_s20 = smov %s2098_s27 }
 0x8c0   : > { %s2388_s21 = smov %s2087_s24  ;;  %27 = sbr.rel (!%p25_p3) target bundleno = 8 (0x8), region = 123 }
 0x8c7   :  { %1594 = vsyncpa [#allocation7], 1 }
 0x8c8   :  { %1596 = vsyncpa [#allocation7 + $0x1], 1 }

</bundles_post_ra>
